<compile_context>
chip_gen: v5e
topology: v5e:2x2
jax: 0.10.0
libtpu: 0.0.40
codegen_flags: <defaults>
</compile_context>

<pallas_src>
import jax
import jax.numpy as jnp
from jax.experimental import pallas as pl
from jax.experimental.pallas import tpu as pltpu

# (in_features, out_features) for the 4 Linear layers of the Encoder.
LAYER_DIMS = [(784, 512), (512, 256), (256, 128), (128, 64)]
NUM_LAYERS = len(LAYER_DIMS)

F_IN = 784
F_IN_PAD = 896    # 784 padded to 7*128  -> lane-dense layer-1 loads
F_OUT = 64
F_OUT_PAD = 128   # 64 padded to 128     -> lane-dense output stores

# Padded (in, out) shapes actually fed to the kernel.
PADDED_W_SHAPES = [(F_IN_PAD, 512), (512, 256), (256, 128), (128, F_OUT_PAD)]


def _round_up(x, m):
    return (x + m - 1) // m * m


def encoder_kernel(x_ref, *refs):
    """refs = (w1, b1, w2, b2, w3, b3, w4, b4, out_ref).

    x_ref:   (TB, 896) bf16 activation tile.
    w_i:     (in, out) bf16, VMEM-resident (constant index_map).
    b_i:     (1, out)  f32.
    out_ref: (TB, 128) f32 (first 64 lanes are the real output).
    """
    out_ref = refs[-1]
    params = refs[:-1]

    h = x_ref[...]                                   # bf16 (TB, 896)
    y = None
    for i in range(NUM_LAYERS):
        w = params[2 * i][...]                       # bf16 (in, out)
        b = params[2 * i + 1][...]                   # f32  (1, out)
        # bf16 MXU matmul with fp32 accumulate; bias + ReLU in fp32 on the VPU.
        y = jnp.dot(h, w, preferred_element_type=jnp.float32) + b
        y = jnp.maximum(y, 0.0)
        h = y.astype(jnp.bfloat16)                   # bf16 feed for next MXU pass
    out_ref[...] = y                                 # fp32, lane-dense (TB, 128)


def prepare_params(params):
    """One-time wrapper-side prep: transpose-layout (in, out) fp32 params ->
    zero-padded bf16 weights + fp32 biases, flattened [w1, b1, ..., w4, b4]."""
    (w1, b1), (w2, b2), (w3, b3), (w4, b4) = params
    w1p = jnp.pad(w1, ((0, F_IN_PAD - F_IN), (0, 0))).astype(jnp.bfloat16)
    w2p = w2.astype(jnp.bfloat16)
    w3p = w3.astype(jnp.bfloat16)
    w4p = jnp.pad(w4, ((0, 0), (0, F_OUT_PAD - F_OUT))).astype(jnp.bfloat16)
    b4p = jnp.pad(b4, ((0, 0), (0, F_OUT_PAD - F_OUT))).astype(jnp.float32)
    return [w1p, b1.astype(jnp.float32),
            w2p, b2.astype(jnp.float32),
            w3p, b3.astype(jnp.float32),
            w4p, b4p]


@jax.jit
def encoder_forward(x, prepared_params):
    """x: (B, 784) float32.  prepared_params: output of prepare_params()."""
    B = x.shape[0]
    tb = min(256, _round_up(max(B, 1), 8))           # 256-row tiles at scale
    b_pad = _round_up(B, tb)
    grid = (b_pad // tb,)

    # Pad batch + feature dims, stream activations in bf16.
    xp = jnp.pad(x, ((0, b_pad - B), (0, F_IN_PAD - F_IN))).astype(jnp.bfloat16)

    in_specs = [pl.BlockSpec((tb, F_IN_PAD), lambda i: (i, 0))]     # x tile
    for (kin, kout) in PADDED_W_SHAPES:
        in_specs.append(pl.BlockSpec((kin, kout), lambda i: (0, 0)))  # weight (resident)
        in_specs.append(pl.BlockSpec((1, kout), lambda i: (0, 0)))    # bias   (resident)

    out = pl.pallas_call(
        encoder_kernel,
        out_shape=jax.ShapeDtypeStruct((b_pad, F_OUT_PAD), jnp.float32),
        grid=grid,
        in_specs=in_specs,
        out_specs=pl.BlockSpec((tb, F_OUT_PAD), lambda i: (i, 0)),
        compiler_params=pltpu.CompilerParams(
            dimension_semantics=("parallel",),       # shard batch across TCs (v7x)
            vmem_limit_bytes=32 << 20,               # safe on v7x's 64 MiB VMEM
        ),
    )(xp, *prepared_params)

    return out[:B, :F_OUT]


def init_params(key):
    """Deterministic init matching PyTorch nn.Linear default:
    U(-1/sqrt(fan_in), 1/sqrt(fan_in)) for weight and bias.
    Weights are stored transposed, i.e. (in, out); biases as (1, out)."""
    params = []
    for (fan_in, fan_out) in LAYER_DIMS:
        key, kw, kb = jax.random.split(key, 3)
        bound = 1.0 / jnp.sqrt(fan_in)
        w = jax.random.uniform(kw, (fan_in, fan_out), jnp.float32,
                               minval=-bound, maxval=bound)
        b = jax.random.uniform(kb, (1, fan_out), jnp.float32,
                               minval=-bound, maxval=bound)
        params.append((w, b))
    return params


def reference_forward(x, params):
    """Plain-JAX fp32 reference for a sanity check."""
    h = x
    for (w, b) in params:
        h = jnp.maximum(h @ w + b, 0.0)
    return h


if __name__ == "__main__":
    key = jax.random.PRNGKey(0)
    key, kx = jax.random.split(key)

    B = 8  # flattened 28x28 MNIST image = 784 features
    x = jax.random.normal(kx, (B, 784), dtype=jnp.float32)

    params = init_params(key)
    prepared = prepare_params(params)

    out = encoder_forward(x, prepared)
    out = jax.block_until_ready(out)

    ref = reference_forward(x, params)
    assert out.shape == (B, F_OUT), out.shape
    # bf16 matmuls (fp32 accumulate) -> loosened tolerance vs the fp32 reference.
    max_err = float(jnp.max(jnp.abs(out - ref)))
    assert jnp.allclose(out, ref, atol=3e-2, rtol=3e-2), max_err

    print("KERNEL_OK")
</pallas_src>

<mosaic_0001>
module attributes {stable_mosaic.version = 11 : i64} {
  func.func @encoder_kernel(%arg0: i32, %arg1: memref<8x896xbf16, #tpu.memory_space<vmem>>, %arg2: memref<896x512xbf16, #tpu.memory_space<vmem>>, %arg3: memref<1x512xf32, #tpu.memory_space<vmem>>, %arg4: memref<512x256xbf16, #tpu.memory_space<vmem>>, %arg5: memref<1x256xf32, #tpu.memory_space<vmem>>, %arg6: memref<256x128xbf16, #tpu.memory_space<vmem>>, %arg7: memref<1x128xf32, #tpu.memory_space<vmem>>, %arg8: memref<128x128xbf16, #tpu.memory_space<vmem>>, %arg9: memref<1x128xf32, #tpu.memory_space<vmem>>, %arg10: memref<8x128xf32, #tpu.memory_space<vmem>>) attributes {dimension_semantics = [#tpu.dimension_semantics<parallel>], iteration_bounds = array<i64: 1>, scalar_prefetch = 0 : i64, scratch_operands = 0 : i64, tpu.core_type = #tpu.core_type<tc>, window_params = [{transform_indices = @transform_0, window_bounds = array<i64: 8, 896>}, {pipeline_mode = #tpu.pipeline_mode<synchronous>, transform_indices = @transform_1, window_bounds = array<i64: 896, 512>}, {pipeline_mode = #tpu.pipeline_mode<synchronous>, transform_indices = @transform_2, window_bounds = array<i64: 1, 512>}, {pipeline_mode = #tpu.pipeline_mode<synchronous>, transform_indices = @transform_3, window_bounds = array<i64: 512, 256>}, {pipeline_mode = #tpu.pipeline_mode<synchronous>, transform_indices = @transform_4, window_bounds = array<i64: 1, 256>}, {pipeline_mode = #tpu.pipeline_mode<synchronous>, transform_indices = @transform_5, window_bounds = array<i64: 256, 128>}, {pipeline_mode = #tpu.pipeline_mode<synchronous>, transform_indices = @transform_6, window_bounds = array<i64: 1, 128>}, {pipeline_mode = #tpu.pipeline_mode<synchronous>, transform_indices = @transform_7, window_bounds = array<i64: 128, 128>}, {pipeline_mode = #tpu.pipeline_mode<synchronous>, transform_indices = @transform_8, window_bounds = array<i64: 1, 128>}, {transform_indices = @transform_9, window_bounds = array<i64: 8, 128>}]} {
    %c0 = arith.constant 0 : index
    %c0_0 = arith.constant 0 : index
    %0 = vector.load %arg1[%c0, %c0_0] : memref<8x896xbf16, #tpu.memory_space<vmem>>, vector<8x896xbf16>
    %c0_1 = arith.constant 0 : index
    %c0_2 = arith.constant 0 : index
    %1 = vector.load %arg2[%c0_1, %c0_2] : memref<896x512xbf16, #tpu.memory_space<vmem>>, vector<896x512xbf16>
    %c0_3 = arith.constant 0 : index
    %c0_4 = arith.constant 0 : index
    %2 = vector.load %arg3[%c0_3, %c0_4] : memref<1x512xf32, #tpu.memory_space<vmem>>, vector<1x512xf32>
    %cst = arith.constant dense<0.000000e+00> : vector<8x512xf32>
    %3 = tpu.matmul %0, %1, %cst {dimension_numbers = #tpu.dot_dimension_numbers<[1], [0], [0], [1], [0, 0, 1, 1], [], []>} : vector<8x896xbf16>, vector<896x512xbf16>, vector<8x512xf32> -> vector<8x512xf32>
    %4 = vector.broadcast %2 : vector<1x512xf32> to vector<8x512xf32>
    %5 = arith.addf %3, %4 : vector<8x512xf32>
    %cst_5 = arith.constant 0.000000e+00 : f32
    %6 = vector.broadcast %cst_5 : f32 to vector<8x512xf32>
    %7 = arith.maximumf %5, %6 : vector<8x512xf32>
    %8 = arith.truncf %7 : vector<8x512xf32> to vector<8x512xbf16>
    %c0_6 = arith.constant 0 : index
    %c0_7 = arith.constant 0 : index
    %9 = vector.load %arg4[%c0_6, %c0_7] : memref<512x256xbf16, #tpu.memory_space<vmem>>, vector<512x256xbf16>
    %c0_8 = arith.constant 0 : index
    %c0_9 = arith.constant 0 : index
    %10 = vector.load %arg5[%c0_8, %c0_9] : memref<1x256xf32, #tpu.memory_space<vmem>>, vector<1x256xf32>
    %cst_10 = arith.constant dense<0.000000e+00> : vector<8x256xf32>
    %11 = tpu.matmul %8, %9, %cst_10 {dimension_numbers = #tpu.dot_dimension_numbers<[1], [0], [0], [1], [0, 0, 1, 1], [], []>} : vector<8x512xbf16>, vector<512x256xbf16>, vector<8x256xf32> -> vector<8x256xf32>
    %12 = vector.broadcast %10 : vector<1x256xf32> to vector<8x256xf32>
    %13 = arith.addf %11, %12 : vector<8x256xf32>
    %cst_11 = arith.constant 0.000000e+00 : f32
    %14 = vector.broadcast %cst_11 : f32 to vector<8x256xf32>
    %15 = arith.maximumf %13, %14 : vector<8x256xf32>
    %16 = arith.truncf %15 : vector<8x256xf32> to vector<8x256xbf16>
    %c0_12 = arith.constant 0 : index
    %c0_13 = arith.constant 0 : index
    %17 = vector.load %arg6[%c0_12, %c0_13] : memref<256x128xbf16, #tpu.memory_space<vmem>>, vector<256x128xbf16>
    %c0_14 = arith.constant 0 : index
    %c0_15 = arith.constant 0 : index
    %18 = vector.load %arg7[%c0_14, %c0_15] : memref<1x128xf32, #tpu.memory_space<vmem>>, vector<1x128xf32>
    %cst_16 = arith.constant dense<0.000000e+00> : vector<8x128xf32>
    %19 = tpu.matmul %16, %17, %cst_16 {dimension_numbers = #tpu.dot_dimension_numbers<[1], [0], [0], [1], [0, 0, 1, 1], [], []>} : vector<8x256xbf16>, vector<256x128xbf16>, vector<8x128xf32> -> vector<8x128xf32>
    %20 = vector.broadcast %18 : vector<1x128xf32> to vector<8x128xf32>
    %21 = arith.addf %19, %20 : vector<8x128xf32>
    %cst_17 = arith.constant 0.000000e+00 : f32
    %22 = vector.broadcast %cst_17 : f32 to vector<8x128xf32>
    %23 = arith.maximumf %21, %22 : vector<8x128xf32>
    %24 = arith.truncf %23 : vector<8x128xf32> to vector<8x128xbf16>
    %c0_18 = arith.constant 0 : index
    %c0_19 = arith.constant 0 : index
    %25 = vector.load %arg8[%c0_18, %c0_19] : memref<128x128xbf16, #tpu.memory_space<vmem>>, vector<128x128xbf16>
    %c0_20 = arith.constant 0 : index
    %c0_21 = arith.constant 0 : index
    %26 = vector.load %arg9[%c0_20, %c0_21] : memref<1x128xf32, #tpu.memory_space<vmem>>, vector<1x128xf32>
    %cst_22 = arith.constant dense<0.000000e+00> : vector<8x128xf32>
    %27 = tpu.matmul %24, %25, %cst_22 {dimension_numbers = #tpu.dot_dimension_numbers<[1], [0], [0], [1], [0, 0, 1, 1], [], []>} : vector<8x128xbf16>, vector<128x128xbf16>, vector<8x128xf32> -> vector<8x128xf32>
    %28 = vector.broadcast %26 : vector<1x128xf32> to vector<8x128xf32>
    %29 = arith.addf %27, %28 : vector<8x128xf32>
    %cst_23 = arith.constant 0.000000e+00 : f32
    %30 = vector.broadcast %cst_23 : f32 to vector<8x128xf32>
    %31 = arith.maximumf %29, %30 : vector<8x128xf32>
    %c0_24 = arith.constant 0 : index
    %c0_25 = arith.constant 0 : index
    %32 = vector.load %arg10[%c0_24, %c0_25] : memref<8x128xf32, #tpu.memory_space<vmem>>, vector<8x128xf32>
    tpu.vector_store %arg10[%c0_24, %c0_25], %31 {strides = array<i32>} : memref<8x128xf32, #tpu.memory_space<vmem>>, vector<8x128xf32>,
    return
  }
  func.func @transform_0(%arg0: i32) -> (i32, i32) {
    %c0_i32 = arith.constant 0 : i32
    %c0_i32_0 = arith.constant 0 : i32
    return %arg0, %c0_i32 : i32, i32
  }
  func.func @transform_1(%arg0: i32) -> (i32, i32) {
    %c0_i32 = arith.constant 0 : i32
    %c0_i32_0 = arith.constant 0 : i32
    %c0_i32_1 = arith.constant 0 : i32
    return %c0_i32, %c0_i32_0 : i32, i32
  }
  func.func @transform_2(%arg0: i32) -> (i32, i32) {
    %c0_i32 = arith.constant 0 : i32
    %c0_i32_0 = arith.constant 0 : i32
    %c0_i32_1 = arith.constant 0 : i32
    return %c0_i32, %c0_i32_0 : i32, i32
  }
  func.func @transform_3(%arg0: i32) -> (i32, i32) {
    %c0_i32 = arith.constant 0 : i32
    %c0_i32_0 = arith.constant 0 : i32
    %c0_i32_1 = arith.constant 0 : i32
    return %c0_i32, %c0_i32_0 : i32, i32
  }
  func.func @transform_4(%arg0: i32) -> (i32, i32) {
    %c0_i32 = arith.constant 0 : i32
    %c0_i32_0 = arith.constant 0 : i32
    %c0_i32_1 = arith.constant 0 : i32
    return %c0_i32, %c0_i32_0 : i32, i32
  }
  func.func @transform_5(%arg0: i32) -> (i32, i32) {
    %c0_i32 = arith.constant 0 : i32
    %c0_i32_0 = arith.constant 0 : i32
    %c0_i32_1 = arith.constant 0 : i32
    return %c0_i32, %c0_i32_0 : i32, i32
  }
  func.func @transform_6(%arg0: i32) -> (i32, i32) {
    %c0_i32 = arith.constant 0 : i32
    %c0_i32_0 = arith.constant 0 : i32
    %c0_i32_1 = arith.constant 0 : i32
    return %c0_i32, %c0_i32_0 : i32, i32
  }
  func.func @transform_7(%arg0: i32) -> (i32, i32) {
    %c0_i32 = arith.constant 0 : i32
    %c0_i32_0 = arith.constant 0 : i32
    %c0_i32_1 = arith.constant 0 : i32
    return %c0_i32, %c0_i32_0 : i32, i32
  }
  func.func @transform_8(%arg0: i32) -> (i32, i32) {
    %c0_i32 = arith.constant 0 : i32
    %c0_i32_0 = arith.constant 0 : i32
    %c0_i32_1 = arith.constant 0 : i32
    return %c0_i32, %c0_i32_0 : i32, i32
  }
  func.func @transform_9(%arg0: i32) -> (i32, i32) {
    %c0_i32 = arith.constant 0 : i32
    %c0_i32_0 = arith.constant 0 : i32
    return %arg0, %c0_i32 : i32, i32
  }
}

</mosaic_0001>

<bundles_post_ra>
// kernel: encoder_forward.1
= control target key start
LH: loop header
LB: loop body
LE: loop exit
PB: predicated region body
PF: predicated region fallthrough
CT: control target
= control target key end

     0   :  { %14 = vsyncpa [#allocation3], 0  ;;  %s4500_s0 = inlined_call_operand.vmem [shape: bf16[8,896], index: 0, kind: input, shape index: {}]   ;;  %s4501_s1 = inlined_call_operand.hbm [shape: bf16[896,512], index: 1, kind: input, shape index: {}]   ;;  %s4502_s2 = inlined_call_operand.vmem [shape: f32[1,512], index: 2, kind: input, shape index: {}]   ;;  %s4503_s3 = inlined_call_operand.hbm [shape: bf16[512,256], index: 3, kind: input, shape index: {}]   ;;  %s4504_s4 = inlined_call_operand.vmem [shape: f32[1,256], index: 4, kind: input, shape index: {}]   ;;  %s4505_s5 = inlined_call_operand.vmem [shape: bf16[256,128], index: 5, kind: input, shape index: {}]   ;;  %s4506_s6 = inlined_call_operand.vmem [shape: f32[1,128], index: 6, kind: input, shape index: {}]   ;;  %s4507_s7 = inlined_call_operand.hbm [shape: bf16[128,128], index: 7, kind: input, shape index: {}]   ;;  %s4508_s8 = inlined_call_operand.vmem [shape: f32[1,128], index: 8, kind: input, shape index: {}]   ;;  %s4509_s9 = inlined_call_operand.hbm [shape: f32[8,128], index: 9, kind: output, shape index: {}]  }
   0x1   :  { %15 = vsyncpa [#allocation6], 0  ;;  %s38_s11 = sshll.u32 %s4503_s3, 4  ;;  %s39_s11 = int_to_ptr.hbm [resolvable:$true] %s38_s11 }
   0x2   :  { %16 = vsyncpa [#allocation4], 0  ;;  %s4268_s12 = smov [#allocation5]   ;;  %s23_s16 = sshll.u32 %s4501_s1, 4  ;;  %s24_s16 = int_to_ptr.hbm [resolvable:$true] %s23_s16 }
   0x3   :  { %s40_s13 = sshll.u32 %s4268_s12, 4  ;;  %s4269_s17 = smov 128   ;;  %s41_s13 = int_to_ptr.vmem [resolvable:$true] %s40_s13 }
   0x4   :  { %s4270_s18 = smov 8   ;;  %s4271_s19 = smov [#allocation2]  }
   0x5   :  { %46 = dma.hbm_to_vmem [thread:$0]  %s39_s11, 8192, %s41_s13, [#allocation6], %s4269_s17, %s4269_s17, %s4270_s18  }
   0x6   :  { %s25_s20 = sshll.u32 %s4271_s19, 4  ;;  %s4272_s21 = smov 256   ;;  %s26_s20 = int_to_ptr.vmem [resolvable:$true] %s25_s20 }
   0x7   :  { %s4273_s22 = smov 16   ;;  %s57_s24 = sshll.u32 %s4507_s7, 4  ;;  %s58_s24 = int_to_ptr.hbm [resolvable:$true] %s57_s24 }
   0x8   :  { %31 = dma.hbm_to_vmem [thread:$0]  %s24_s16, 28672, %s26_s20, [#allocation3], %s4272_s21, %s4272_s21, %s4273_s22  }
   0x9   :  { %s4274_s25 = smov [#allocation7]   ;;  %s4275_s27 = smov 64  }
   0xa   :  { %s59_s26 = sshll.u32 %s4274_s25, 4  ;;  %s4276_s1 = smov 4   ;;  %s60_s26 = int_to_ptr.vmem [resolvable:$true] %s59_s26 }
   0xb   :  { %65 = dma.hbm_to_vmem [thread:$0]  %s58_s24, 1024, %s60_s26, [#allocation6], %s4275_s27, %s4275_s27, %s4276_s1  }
   0xc   :  { %4262 = dma.done.wait [#allocation3], 28672  }
   0xd   :  { %4263 = vsyncadd [#allocation3], 4294938624 }
   0xe   :  { %4264 = dma.done.wait [#allocation6], 9216  }
   0xf   :  { %4265 = vsyncadd [#allocation6], 4294958080  ;;  %v2708_v0 = vld [vmem:[#allocation2 + $0xe0] sm:$0xf]  ;;  %v3872_v1 = vld [vmem:[#allocation2 + $0xec] sm:$0xf0] }
  0x10   :  { %v2836_v2 = vld [vmem:[#allocation2 + $0x1e0] sm:$0xf]  ;;  %v2709_v3 = vor.u32 %v3872_v1, %v2708_v0  ;;  %v3904_v4 = vld [vmem:[#allocation2 + $0x1ec] sm:$0xf0]  ;;  %s4277_s3 = smov [#allocation8]   ;;  %s2583_s26 = sshll.u32 %s4509_s9, 4  ;;  %s2584_s26 = int_to_ptr.hbm [resolvable:$true] %s2583_s26 }
  0x11   :  { %v2964_v5 = vld [vmem:[#allocation2 + $0x2e0] sm:$0xf]  ;;  %v3936_v6 = vld [vmem:[#allocation2 + $0x2ec] sm:$0xf0]  ;;  %v2837_v7 = vor.u32 %v3904_v4, %v2836_v2  ;;  %s2581_s23 = sshll.u32 %s4277_s3, 4  ;;  %s2582_s23 = int_to_ptr.vmem [resolvable:$true] %s2581_s23 }
  0x12   :  { %v2965_v8 = vor.u32 %v3936_v6, %v2964_v5  ;;  %v3092_v9 = vld [vmem:[#allocation2 + $0x3e0] sm:$0xf]  ;;  %v3968_v10 = vld [vmem:[#allocation2 + $0x3ec] sm:$0xf0]  ;;  %1463 = vmatpush.bf16.msra.mxu0 %v2709_v3 }
  0x13   :  { %v2692_v11 = vld [vmem:[#allocation2 + $0xc0] sm:$0xf]  ;;  %v3093_v12 = vor.u32 %v3968_v10, %v3092_v9  ;;  %v3868_v13 = vld [vmem:[#allocation2 + $0xcc] sm:$0xf0]  ;;  %1476 = vmatpush.bf16.msra.mxu1 %v2837_v7 }
  0x14   :  { %v2820_v14 = vld [vmem:[#allocation2 + $0x1c0] sm:$0xf]  ;;  %v3900_v15 = vld [vmem:[#allocation2 + $0x1cc] sm:$0xf0]  ;;  %1489 = vmatpush.bf16.msra.mxu2 %v2965_v8  ;;  %v2693_v16 = vor.u32 %v3868_v13, %v2692_v11 }
  0x15   :  { %v2821_v17 = vor.u32 %v3900_v15, %v2820_v14  ;;  %v2948_v18 = vld [vmem:[#allocation2 + $0x2c0] sm:$0xf]  ;;  %v3932_v19 = vld [vmem:[#allocation2 + $0x2cc] sm:$0xf0]  ;;  %1502 = vmatpush.bf16.msra.mxu3 %v3093_v12 }
  0x16   :  { %v3076_v20 = vld [vmem:[#allocation2 + $0x3c0] sm:$0xf]  ;;  %v2949_v21 = vor.u32 %v3932_v19, %v2948_v18  ;;  %v3964_v22 = vld [vmem:[#allocation2 + $0x3cc] sm:$0xf0]  ;;  %1464 = vmatpush.bf16.msra.mxu0 %v2693_v16 }
  0x17   :  { %v2676_v23 = vld [vmem:[#allocation2 + $0xa0] sm:$0xf]  ;;  %v3864_v24 = vld [vmem:[#allocation2 + $0xac] sm:$0xf0]  ;;  %v3077_v25 = vor.u32 %v3964_v22, %v3076_v20  ;;  %1477 = vmatpush.bf16.msra.mxu1 %v2821_v17 }
  0x18   :  { %v2804_v26 = vld [vmem:[#allocation2 + $0x1a0] sm:$0xf]  ;;  %v3896_v27 = vld [vmem:[#allocation2 + $0x1ac] sm:$0xf0]  ;;  %v2677_v29 = vor.u32 %v3864_v24, %v2676_v23  ;;  %1490 = vmatpush.bf16.msra.mxu2 %v2949_v21 }
  0x19   :  { %v2932_v28 = vld [vmem:[#allocation2 + $0x2a0] sm:$0xf]  ;;  %v3928_v30 = vld [vmem:[#allocation2 + $0x2ac] sm:$0xf0]  ;;  %v2805_v33 = vor.u32 %v3896_v27, %v2804_v26  ;;  %1503 = vmatpush.bf16.msra.mxu3 %v3077_v25 }
  0x1a   :  { %v3060_v31 = vld [vmem:[#allocation2 + $0x3a0] sm:$0xf]  ;;  %v3960_v32 = vld [vmem:[#allocation2 + $0x3ac] sm:$0xf0]  ;;  %v2933_v34 = vor.u32 %v3928_v30, %v2932_v28  ;;  %1465 = vmatpush.bf16.msra.mxu0 %v2677_v29 }
  0x1b   :  { %v2660_v35 = vld [vmem:[#allocation2 + $0x80] sm:$0xf]  ;;  %v3860_v36 = vld [vmem:[#allocation2 + $0x8c] sm:$0xf0]  ;;  %v3061_v38 = vor.u32 %v3960_v32, %v3060_v31  ;;  %1478 = vmatpush.bf16.msra.mxu1 %v2805_v33 }
  0x1c   :  { %v2788_v37 = vld [vmem:[#allocation2 + $0x180] sm:$0xf]  ;;  %v3892_v39 = vld [vmem:[#allocation2 + $0x18c] sm:$0xf0]  ;;  %v2661_v44 = vor.u32 %v3860_v36, %v2660_v35  ;;  %1491 = vmatpush.bf16.msra.mxu2 %v2933_v34 }
  0x1d   :  { %v2916_v40 = vld [vmem:[#allocation2 + $0x280] sm:$0xf]  ;;  %v3924_v41 = vld [vmem:[#allocation2 + $0x28c] sm:$0xf0]  ;;  %v2789_v45 = vor.u32 %v3892_v39, %v2788_v37  ;;  %1504 = vmatpush.bf16.msra.mxu3 %v3061_v38  ;;  %v3870_v37 = vld [vmem:[#allocation2 + $0xe4] sm:$0xf] }
  0x1e   :  { %v3044_v42 = vld [vmem:[#allocation2 + $0x380] sm:$0xf]  ;;  %v3956_v43 = vld [vmem:[#allocation2 + $0x38c] sm:$0xf0]  ;;  %v2917_v46 = vor.u32 %v3924_v41, %v2916_v40  ;;  %1466 = vmatpush.bf16.msra.mxu0 %v2661_v44  ;;  %v2710_v38 = vld [vmem:[#allocation2 + $0xf0] sm:$0xf0] }
  0x1f   :  { %v2644_v47 = vld [vmem:[#allocation2 + $0x60] sm:$0xf]  ;;  %v3856_v48 = vld [vmem:[#allocation2 + $0x6c] sm:$0xf0]  ;;  %v3045_v50 = vor.u32 %v3956_v43, %v3044_v42  ;;  %1479 = vmatpush.bf16.msra.mxu1 %v2789_v45 }
  0x20   :  { %v2772_v49 = vld [vmem:[#allocation2 + $0x160] sm:$0xf]  ;;  %v3888_v51 = vld [vmem:[#allocation2 + $0x16c] sm:$0xf0]  ;;  %v2645_v56 = vor.u32 %v3856_v48, %v2644_v47  ;;  %1492 = vmatpush.bf16.msra.mxu2 %v2917_v46  ;;  %v2713_v46 = vor.u32 %v3870_v37, %v2710_v38 }
  0x21   :  { %v2900_v52 = vld [vmem:[#allocation2 + $0x260] sm:$0xf]  ;;  %v3920_v53 = vld [vmem:[#allocation2 + $0x26c] sm:$0xf0]  ;;  %v2773_v57 = vor.u32 %v3888_v51, %v2772_v49  ;;  %1505 = vmatpush.bf16.msra.mxu3 %v3045_v50  ;;  %v3866_v50 = vld [vmem:[#allocation2 + $0xc4] sm:$0xf] }
  0x22   :  { %v3028_v54 = vld [vmem:[#allocation2 + $0x360] sm:$0xf]  ;;  %v3952_v55 = vld [vmem:[#allocation2 + $0x36c] sm:$0xf0]  ;;  %v2901_v58 = vor.u32 %v3920_v53, %v2900_v52  ;;  %1467 = vmatpush.bf16.msra.mxu0 %v2645_v56  ;;  %v2694_v51 = vld [vmem:[#allocation2 + $0xd0] sm:$0xf0] }
  0x23   :  { %v2628_v59 = vld [vmem:[#allocation2 + $0x40] sm:$0xf]  ;;  %v3852_v60 = vld [vmem:[#allocation2 + $0x4c] sm:$0xf0]  ;;  %v3029_v62 = vor.u32 %v3952_v55, %v3028_v54  ;;  %1480 = vmatpush.bf16.msra.mxu1 %v2773_v57 }
  0x24   :  { %v2756_v61 = vld [vmem:[#allocation2 + $0x140] sm:$0xf]  ;;  %v3884_v63 = vld [vmem:[#allocation2 + $0x14c] sm:$0xf0]  ;;  %v2629_v4 = vor.u32 %v3852_v60, %v2628_v59  ;;  %1493 = vmatpush.bf16.msra.mxu2 %v2901_v58  ;;  %v2697_v59 = vor.u32 %v3866_v50, %v2694_v51 }
  0x25   :  { %v2884_v0 = vld [vmem:[#allocation2 + $0x240] sm:$0xf]  ;;  %v3916_v1 = vld [vmem:[#allocation2 + $0x24c] sm:$0xf0]  ;;  %v2757_v5 = vor.u32 %v3884_v63, %v2756_v61  ;;  %1506 = vmatpush.bf16.msra.mxu3 %v3029_v62  ;;  %v3862_v62 = vld [vmem:[#allocation2 + $0xa4] sm:$0xf] }
  0x26   :  { %v3012_v2 = vld [vmem:[#allocation2 + $0x340] sm:$0xf]  ;;  %v3948_v3 = vld [vmem:[#allocation2 + $0x34c] sm:$0xf0]  ;;  %v2885_v6 = vor.u32 %v3916_v1, %v2884_v0  ;;  %1468 = vmatpush.bf16.msra.mxu0 %v2629_v4  ;;  %v2678_v63 = vld [vmem:[#allocation2 + $0xb0] sm:$0xf0] }
  0x27   :  { %v2612_v7 = vld [vmem:[#allocation2 + $0x20] sm:$0xf]  ;;  %v3848_v8 = vld [vmem:[#allocation2 + $0x2c] sm:$0xf0]  ;;  %v3013_v10 = vor.u32 %v3948_v3, %v3012_v2  ;;  %1481 = vmatpush.bf16.msra.mxu1 %v2757_v5  ;;  %v81_v2 = vld [vmem:[%s4500_s0 + $0x8] sm:$0xff] }
  0x28   :  { %v2740_v9 = vld [vmem:[#allocation2 + $0x120] sm:$0xf]  ;;  %v3880_v11 = vld [vmem:[#allocation2 + $0x12c] sm:$0xf0]  ;;  %v2613_v16 = vor.u32 %v3848_v8, %v2612_v7  ;;  %1494 = vmatpush.bf16.msra.mxu2 %v2885_v6  ;;  %v324_v8 = vunpack.c.l.b16 %v81_v2 }
  0x29   :  { %v2868_v12 = vld [vmem:[#allocation2 + $0x220] sm:$0xf]  ;;  %v3912_v13 = vld [vmem:[#allocation2 + $0x22c] sm:$0xf0]  ;;  %v2741_v19 = vor.u32 %v3880_v11, %v2740_v9  ;;  %1507 = vmatpush.bf16.msra.mxu3 %v3013_v10  ;;  %v325_v10 = vunpack.c.h.b16 %v81_v2  ;;  %v2681_v11 = vor.u32 %v3862_v62, %v2678_v63 }
  0x2a   :  { %v2996_v14 = vld [vmem:[#allocation2 + $0x320] sm:$0xf]  ;;  %v3944_v15 = vld [vmem:[#allocation2 + $0x32c] sm:$0xf0]  ;;  %v2869_v20 = vor.u32 %v3912_v13, %v2868_v12  ;;  %1469 = vmatpush.bf16.msra.mxu0 %v2613_v16  ;;  %v3858_v16 = vld [vmem:[#allocation2 + $0x84] sm:$0xf] }
  0x2b   :  { %v2596_v17 = vld [vmem:[#allocation2] sm:$0xf]  ;;  %v3844_v18 = vld [vmem:[#allocation2 + $0xc] sm:$0xf0]  ;;  %v2997_v24 = vor.u32 %v3944_v15, %v2996_v14  ;;  %1482 = vmatpush.bf16.msra.mxu1 %v2741_v19 }
  0x2c   :  { %v2724_v21 = vld [vmem:[#allocation2 + $0x100] sm:$0xf]  ;;  %v3876_v22 = vld [vmem:[#allocation2 + $0x10c] sm:$0xf0]  ;;  %v2597_v31 = vor.u32 %v3844_v18, %v2596_v17  ;;  %1495 = vmatpush.bf16.msra.mxu2 %v2869_v20  ;;  %v2662_v17 = vld [vmem:[#allocation2 + $0x90] sm:$0xf0]  ;;  %v4343_v18 = vpack.c.b16 %v324_v8, %v324_v8  ;;  %v4347_v20 = vpack.c.b16 %v325_v10, %v325_v10 }
  0x2d   :  { %v2852_v23 = vld [vmem:[#allocation2 + $0x200] sm:$0xf]  ;;  %v3908_v25 = vld [vmem:[#allocation2 + $0x20c] sm:$0xf0]  ;;  %v2725_v35 = vor.u32 %v3876_v22, %v2724_v21  ;;  %1508 = vmatpush.bf16.msra.mxu3 %v2997_v24  ;;  %v3902_v8 = vld [vmem:[#allocation2 + $0x1e4] sm:$0xf] }
  0x2e   :  { %v2980_v26 = vld [vmem:[#allocation2 + $0x300] sm:$0xf]  ;;  %v3940_v27 = vld [vmem:[#allocation2 + $0x30c] sm:$0xf0]  ;;  %v2853_v36 = vor.u32 %v3908_v25, %v2852_v23  ;;  %1470 = vmatpush.bf16.msra.mxu0 %v2597_v31  ;;  %v3934_v10 = vld [vmem:[#allocation2 + $0x2e4] sm:$0xf] }
  0x2f   :  { %v3220_v28 = vld [vmem:[#allocation2 + $0x4e0] sm:$0xf]  ;;  %v4000_v29 = vld [vmem:[#allocation2 + $0x4ec] sm:$0xf0]  ;;  %v2981_v39 = vor.u32 %v3940_v27, %v2980_v26  ;;  %1483 = vmatpush.bf16.msra.mxu1 %v2725_v35 }
  0x30   :  { %v3348_v30 = vld [vmem:[#allocation2 + $0x5e0] sm:$0xf]  ;;  %v4032_v32 = vld [vmem:[#allocation2 + $0x5ec] sm:$0xf0]  ;;  %v3221_v40 = vor.u32 %v4000_v29, %v3220_v28  ;;  %1496 = vmatpush.bf16.msra.mxu2 %v2853_v36  ;;  %v2665_v28 = vor.u32 %v3858_v16, %v2662_v17 }
  0x31   :  { %v3476_v33 = vld [vmem:[#allocation2 + $0x6e0] sm:$0xf]  ;;  %v4064_v34 = vld [vmem:[#allocation2 + $0x6ec] sm:$0xf0]  ;;  %v3349_v41 = vor.u32 %v4032_v32, %v3348_v30  ;;  %1509 = vmatpush.bf16.msra.mxu3 %v2981_v39  ;;  %v3854_v32 = vld [vmem:[#allocation2 + $0x64] sm:$0xf] }
  0x32   :  { %v3477_v42 = vor.u32 %v4064_v34, %v3476_v33  ;;  %v3204_v43 = vld [vmem:[#allocation2 + $0x4c0] sm:$0xf]  ;;  %v3996_v44 = vld [vmem:[#allocation2 + $0x4cc] sm:$0xf0]  ;;  %1515 = vmatpush.bf16.msrb.mxu0 %v3221_v40  ;;  %v2646_v33 = vld [vmem:[#allocation2 + $0x70] sm:$0xf0] }
  0x33   :  { %v3332_v45 = vld [vmem:[#allocation2 + $0x5c0] sm:$0xf]  ;;  %v4028_v47 = vld [vmem:[#allocation2 + $0x5cc] sm:$0xf0]  ;;  %v3205_v52 = vor.u32 %v3996_v44, %v3204_v43  ;;  %1528 = vmatpush.bf16.msrb.mxu1 %v3349_v41  ;;  %1497 = vmatmul.bf16.vlgmr.msra.gmra.mxu2 %v4343_v18  ;;  %v2649_v40 = vor.u32 %v3854_v32, %v2646_v33  ;;  %v3850_v44 = vld [vmem:[#allocation2 + $0x44] sm:$0xf] }
  0x34   :  { %v3460_v48 = vld [vmem:[#allocation2 + $0x6c0] sm:$0xf]  ;;  %v4060_v49 = vld [vmem:[#allocation2 + $0x6cc] sm:$0xf0]  ;;  %1541 = vmatpush.bf16.msrb.mxu2 %v3477_v42  ;;  %v3333_v54 = vor.u32 %v4028_v47, %v3332_v45  ;;  %1510 = vmatmul.bf16.vlgmr.msra.gmra.mxu3 %v4347_v20  ;;  %v2630_v45 = vld [vmem:[#allocation2 + $0x50] sm:$0xf0] }
  0x35   :  { %v3188_v53 = vld [vmem:[#allocation2 + $0x4a0] sm:$0xf]  ;;  %v3461_v55 = vor.u32 %v4060_v49, %v3460_v48  ;;  %v3992_v56 = vld [vmem:[#allocation2 + $0x4ac] sm:$0xf0]  ;;  %1554 = vmatpush.bf16.msrb.mxu3 %v2713_v46  ;;  %v3930_v32 = vld [vmem:[#allocation2 + $0x2c4] sm:$0xf] }
  0x36   :  { %v3316_v57 = vld [vmem:[#allocation2 + $0x5a0] sm:$0xf]  ;;  %v4024_v58 = vld [vmem:[#allocation2 + $0x5ac] sm:$0xf0]  ;;  %1516 = vmatpush.bf16.msrb.mxu0 %v3205_v52  ;;  %v3189_v0 = vor.u32 %v3992_v56, %v3188_v53  ;;  %v2633_v52 = vor.u32 %v3850_v44, %v2630_v45  ;;  %v3846_v56 = vld [vmem:[#allocation2 + $0x24] sm:$0xf] }
  0x37   :  { %v3444_v60 = vld [vmem:[#allocation2 + $0x6a0] sm:$0xf]  ;;  %v4056_v61 = vld [vmem:[#allocation2 + $0x6ac] sm:$0xf0]  ;;  %v3317_v1 = vor.u32 %v4024_v58, %v3316_v57  ;;  %1529 = vmatpush.bf16.msrb.mxu1 %v3333_v54  ;;  %v2614_v57 = vld [vmem:[#allocation2 + $0x30] sm:$0xf0] }
  0x38   :  { %v80_v3 = vld [vmem:[%s4500_s0] sm:$0xff]  ;;  %1542 = vmatpush.bf16.msrb.mxu2 %v3461_v55  ;;  %v3445_v4 = vor.u32 %v4056_v61, %v3444_v60  ;;  %v3988_v6 = vld [vmem:[#allocation2 + $0x48c] sm:$0xf0] }
  0x39   :  { %v3172_v5 = vld [vmem:[#allocation2 + $0x480] sm:$0xf]  ;;  %v322_v9 = vunpack.c.l.b16 %v80_v3  ;;  %1555 = vmatpush.bf16.msrb.mxu3 %v2697_v59  ;;  %v4020_v12 = vld [vmem:[#allocation2 + $0x58c] sm:$0xf0]  ;;  %v323_v15 = vunpack.c.h.b16 %v80_v3  ;;  %v83_v3 = vld [vmem:[%s4500_s0 + $0x18] sm:$0xf] }
  0x3a   :  { %v3300_v7 = vld [vmem:[#allocation2 + $0x580] sm:$0xf]  ;;  %v4052_v14 = vld [vmem:[#allocation2 + $0x68c] sm:$0xf0]  ;;  %1517 = vmatpush.bf16.msrb.mxu0 %v3189_v0  ;;  %v3173_v21 = vor.u32 %v3988_v6, %v3172_v5  ;;  %v3842_v5 = vld [vmem:[#allocation2 + $0x4] sm:$0xf] }
  0x3b   :  { %v3428_v13 = vld [vmem:[#allocation2 + $0x680] sm:$0xf]  ;;  %v4345_v19 = vpack.c.b16 %v322_v9, %v322_v9  ;;  %v4349_v22 = vpack.c.b16 %v323_v15, %v323_v15  ;;  %1530 = vmatpush.bf16.msrb.mxu1 %v3317_v1  ;;  %v3301_v23 = vor.u32 %v4020_v12, %v3300_v7  ;;  %v3984_v26 = vld [vmem:[#allocation2 + $0x46c] sm:$0xf0]  ;;  %v2598_v6 = vld [vmem:[#allocation2 + $0x10] sm:$0xf0]  ;;  %v328_v15 = vunpack.c.l.b16 %v83_v3 }
  0x3c   :  { %1543 = vmatpush.bf16.msrb.mxu2 %v3445_v4  ;;  %v3429_v24 = vor.u32 %v4052_v14, %v3428_v13  ;;  %v3156_v25 = vld [vmem:[#allocation2 + $0x460] sm:$0xf]  ;;  %v4016_v29 = vld [vmem:[#allocation2 + $0x56c] sm:$0xf0]  ;;  %v2617_v4 = vor.u32 %v3846_v56, %v2614_v57  ;;  %v2838_v9 = vld [vmem:[#allocation2 + $0x1f0] sm:$0xf0] }
  0x3d   :  { %v3284_v27 = vld [vmem:[#allocation2 + $0x560] sm:$0xf]  ;;  %1556 = vmatpush.bf16.msrb.mxu3 %v2681_v11  ;;  %v4048_v31 = vld [vmem:[#allocation2 + $0x66c] sm:$0xf0]  ;;  %1471 = vmatmul.bf16.vlgmr.msra.gmra.mxu0 %v4345_v19  ;;  %v3157_v34 = vor.u32 %v3984_v26, %v3156_v25  ;;  %v2966_v12 = vld [vmem:[#allocation2 + $0x2f0] sm:$0xf0]  ;;  %v2601_v26 = vor.u32 %v3842_v5, %v2598_v6 }
  0x3e   :  { %v3412_v30 = vld [vmem:[#allocation2 + $0x660] sm:$0xf]  ;;  %1518 = vmatpush.bf16.msrb.mxu0 %v3173_v21  ;;  %1484 = vmatmul.bf16.vlgmr.msra.gmra.mxu1 %v4349_v22  ;;  %v3285_v35 = vor.u32 %v4016_v29, %v3284_v27  ;;  %v3980_v38 = vld [vmem:[#allocation2 + $0x44c] sm:$0xf0]  ;;  %v3966_v13 = vld [vmem:[#allocation2 + $0x3e4] sm:$0xf]  ;;  %v2841_v27 = vor.u32 %v3902_v8, %v2838_v9 }
  0x3f   :  { %1531 = vmatpush.bf16.msrb.mxu1 %v3301_v23  ;;  %v3413_v36 = vor.u32 %v4048_v31, %v3412_v30  ;;  %v3140_v37 = vld [vmem:[#allocation2 + $0x440] sm:$0xf]  ;;  %v4012_v41 = vld [vmem:[#allocation2 + $0x54c] sm:$0xf0]  ;;  %v3094_v14 = vld [vmem:[#allocation2 + $0x3f0] sm:$0xf0] }
  0x40   :  { %1544 = vmatpush.bf16.msrb.mxu2 %v3429_v24  ;;  %v3268_v39 = vld [vmem:[#allocation2 + $0x540] sm:$0xf]  ;;  %v4044_v43 = vld [vmem:[#allocation2 + $0x64c] sm:$0xf0]  ;;  %v3141_v46 = vor.u32 %v3980_v38, %v3140_v37  ;;  %v3998_v21 = vld [vmem:[#allocation2 + $0x4e4] sm:$0xf]  ;;  %v3097_v29 = vor.u32 %v3966_v13, %v3094_v14  ;;  %v4361_v37 = vpack.c.b16 %v328_v15, %v328_v15 }
  0x41   :  { %1557 = vmatpush.bf16.msrb.mxu3 %v2665_v28  ;;  %v3396_v42 = vld [vmem:[#allocation2 + $0x640] sm:$0xf]  ;;  %v3269_v47 = vor.u32 %v4012_v41, %v3268_v39  ;;  %v3976_v50 = vld [vmem:[#allocation2 + $0x42c] sm:$0xf0]  ;;  %v3222_v23 = vld [vmem:[#allocation2 + $0x4f0] sm:$0xf0]  ;;  %v2969_v28 = vor.u32 %v3934_v10, %v2966_v12 }
  0x42   :  { %1519 = vmatpush.bf16.msrb.mxu0 %v3157_v34  ;;  %v3397_v48 = vor.u32 %v4044_v43, %v3396_v42  ;;  %v3124_v49 = vld [vmem:[#allocation2 + $0x420] sm:$0xf]  ;;  %v4008_v53 = vld [vmem:[#allocation2 + $0x52c] sm:$0xf0]  ;;  %v3898_v30 = vld [vmem:[#allocation2 + $0x1c4] sm:$0xf]  ;;  %v3225_v33 = vor.u32 %v3998_v21, %v3222_v23 }
  0x43   :  { %1532 = vmatpush.bf16.msrb.mxu1 %v3285_v35  ;;  %v3252_v51 = vld [vmem:[#allocation2 + $0x520] sm:$0xf]  ;;  %v4040_v55 = vld [vmem:[#allocation2 + $0x62c] sm:$0xf0]  ;;  %v3125_v59 = vor.u32 %v3976_v50, %v3124_v49  ;;  %v2822_v31 = vld [vmem:[#allocation2 + $0x1d0] sm:$0xf0] }
  0x44   :  { %1545 = vmatpush.bf16.msrb.mxu2 %v3413_v36  ;;  %v3380_v54 = vld [vmem:[#allocation2 + $0x620] sm:$0xf]  ;;  %v3972_v60 = vld [vmem:[#allocation2 + $0x40c] sm:$0xf0]  ;;  %v3253_v63 = vor.u32 %v4008_v53, %v3252_v51  ;;  %v2950_v34 = vld [vmem:[#allocation2 + $0x2d0] sm:$0xf0]  ;;  %v2825_v42 = vor.u32 %v3898_v30, %v2822_v31 }
  0x45   :  { %1558 = vmatpush.bf16.msrb.mxu3 %v2649_v40  ;;  %v3108_v58 = vld [vmem:[#allocation2 + $0x400] sm:$0xf]  ;;  %v4004_v62 = vld [vmem:[#allocation2 + $0x50c] sm:$0xf0]  ;;  %v3381_v0 = vor.u32 %v4040_v55, %v3380_v54  ;;  %v3962_v35 = vld [vmem:[#allocation2 + $0x3c4] sm:$0xf]  ;;  %v2953_v43 = vor.u32 %v3930_v32, %v2950_v34 }
  0x46   :  { %1520 = vmatpush.bf16.msrb.mxu0 %v3141_v46  ;;  %v3236_v61 = vld [vmem:[#allocation2 + $0x500] sm:$0xf]  ;;  %v4036_v2 = vld [vmem:[#allocation2 + $0x60c] sm:$0xf0]  ;;  %v3109_v11 = vor.u32 %v3972_v60, %v3108_v58  ;;  %v3078_v36 = vld [vmem:[#allocation2 + $0x3d0] sm:$0xf0] }
  0x47   :  { %1533 = vmatpush.bf16.msrb.mxu1 %v3269_v47  ;;  %v3364_v1 = vld [vmem:[#allocation2 + $0x600] sm:$0xf]  ;;  %v82_v7 = vld [vmem:[%s4500_s0 + $0x10] sm:$0xff]  ;;  %v3237_v16 = vor.u32 %v4004_v62, %v3236_v61  ;;  %v3994_v38 = vld [vmem:[#allocation2 + $0x4c4] sm:$0xf]  ;;  %v3081_v44 = vor.u32 %v3962_v35, %v3078_v36 }
  0x48   :  { %1546 = vmatpush.bf16.msrb.mxu2 %v3397_v48  ;;  %v3365_v17 = vor.u32 %v4036_v2, %v3364_v1  ;;  %v326_v24 = vunpack.c.l.b16 %v82_v7  ;;  %v327_v25 = vunpack.c.h.b16 %v82_v7  ;;  %v3206_v39 = vld [vmem:[#allocation2 + $0x4d0] sm:$0xf0]  ;;  %v3894_v45 = vld [vmem:[#allocation2 + $0x1a4] sm:$0xf] }
  0x49   :  { %1559 = vmatpush.bf16.msrb.mxu3 %v2633_v52  ;;  %v2806_v46 = vld [vmem:[#allocation2 + $0x1b0] sm:$0xf0]  ;;  %v3926_v47 = vld [vmem:[#allocation2 + $0x2a4] sm:$0xf]  ;;  %v3209_v48 = vor.u32 %v3994_v38, %v3206_v39 }
  0x4a   :  { %1521 = vmatpush.bf16.msrb.mxu0 %v3125_v59  ;;  %v4363_v40 = vpack.c.b16 %v326_v24, %v326_v24  ;;  %v4365_v41 = vpack.c.b16 %v327_v25, %v327_v25  ;;  %v2934_v49 = vld [vmem:[#allocation2 + $0x2b0] sm:$0xf0]  ;;  %v3958_v50 = vld [vmem:[#allocation2 + $0x3a4] sm:$0xf]  ;;  %v2809_v54 = vor.u32 %v3894_v45, %v2806_v46 }
  0x4b   :  { %1534 = vmatpush.bf16.msrb.mxu1 %v3253_v63  ;;  %v3062_v51 = vld [vmem:[#allocation2 + $0x3b0] sm:$0xf0]  ;;  %v3990_v52 = vld [vmem:[#allocation2 + $0x4a4] sm:$0xf]  ;;  %v2937_v55 = vor.u32 %v3926_v47, %v2934_v49 }
  0x4c   :  { %1547 = vmatpush.bf16.msrb.mxu2 %v3381_v0  ;;  %v3190_v53 = vld [vmem:[#allocation2 + $0x4b0] sm:$0xf0]  ;;  %v3065_v56 = vor.u32 %v3958_v50, %v3062_v51  ;;  %v3890_v57 = vld [vmem:[#allocation2 + $0x184] sm:$0xf] }
  0x4d   :  { %1560 = vmatpush.bf16.msrb.mxu3 %v2617_v4  ;;  %v2790_v58 = vld [vmem:[#allocation2 + $0x190] sm:$0xf0]  ;;  %v3922_v59 = vld [vmem:[#allocation2 + $0x284] sm:$0xf]  ;;  %v3193_v60 = vor.u32 %v3990_v52, %v3190_v53 }
  0x4e   :  { %1522 = vmatpush.bf16.msrb.mxu0 %v3109_v11  ;;  %v2918_v61 = vld [vmem:[#allocation2 + $0x290] sm:$0xf0]  ;;  %v3954_v62 = vld [vmem:[#allocation2 + $0x384] sm:$0xf]  ;;  %v2793_v2 = vor.u32 %v3890_v57, %v2790_v58 }
  0x4f   :  { %1535 = vmatpush.bf16.msrb.mxu1 %v3237_v16  ;;  %v3046_v63 = vld [vmem:[#allocation2 + $0x390] sm:$0xf0]  ;;  %v3986_v0 = vld [vmem:[#allocation2 + $0x484] sm:$0xf]  ;;  %v2921_v3 = vor.u32 %v3922_v59, %v2918_v61 }
  0x50   :  { %1548 = vmatpush.bf16.msrb.mxu2 %v3365_v17  ;;  %v3174_v1 = vld [vmem:[#allocation2 + $0x490] sm:$0xf0]  ;;  %v3049_v4 = vor.u32 %v3954_v62, %v3046_v63  ;;  %v3886_v5 = vld [vmem:[#allocation2 + $0x164] sm:$0xf]  ;;  %v2716_v62 = vld [vmem:[#allocation2 + $0xe8] sm:$0xf] }
  0x51   :  { %1561 = vmatpush.bf16.msrb.mxu3 %v2601_v26  ;;  %1523 = vmatmul.bf16.vlgmr.msrb.gmra.mxu0 %v4363_v40  ;;  %v2774_v6 = vld [vmem:[#allocation2 + $0x170] sm:$0xf0]  ;;  %v3918_v7 = vld [vmem:[#allocation2 + $0x264] sm:$0xf]  ;;  %v3177_v8 = vor.u32 %v3986_v0, %v3174_v1  ;;  %v3873_v63 = vld [vmem:[#allocation2 + $0xf4] sm:$0xf0] }
  0x52   :  { %1567 = vmatpush.bf16.msra.mxu0 %v2841_v27  ;;  %1536 = vmatmul.bf16.vlgmr.msrb.gmra.mxu1 %v4365_v41  ;;  %v2902_v9 = vld [vmem:[#allocation2 + $0x270] sm:$0xf0]  ;;  %v3950_v10 = vld [vmem:[#allocation2 + $0x364] sm:$0xf]  ;;  %v2777_v14 = vor.u32 %v3886_v5, %v2774_v6 }
  0x53   :  { %1580 = vmatpush.bf16.msra.mxu1 %v2969_v28  ;;  %1549 = vmatmul.bf16.vlgmr.msrb.gmra.mxu2 %v4361_v37  ;;  %v3030_v11 = vld [vmem:[#allocation2 + $0x370] sm:$0xf0]  ;;  %v3982_v12 = vld [vmem:[#allocation2 + $0x464] sm:$0xf]  ;;  %v2905_v15 = vor.u32 %v3918_v7, %v2902_v9  ;;  %v2717_v7 = vor.u32 %v3873_v63, %v2716_v62 }
  0x54   :  { %1593 = vmatpush.bf16.msra.mxu2 %v3097_v29  ;;  %1562 = vmatmul.bf16.vlgmr.msrb.gmra.mxu3 %v4345_v19  ;;  %v3158_v13 = vld [vmem:[#allocation2 + $0x470] sm:$0xf0]  ;;  %v3033_v16 = vor.u32 %v3950_v10, %v3030_v11  ;;  %v3882_v17 = vld [vmem:[#allocation2 + $0x144] sm:$0xf] }
  0x55   :  { %1606 = vmatpush.bf16.msra.mxu3 %v3225_v33  ;;  %v2758_v21 = vld [vmem:[#allocation2 + $0x150] sm:$0xf0]  ;;  %v3914_v23 = vld [vmem:[#allocation2 + $0x244] sm:$0xf]  ;;  %v3161_v24 = vor.u32 %v3982_v12, %v3158_v13  ;;  %v2700_v13 = vld [vmem:[#allocation2 + $0xc8] sm:$0xf] }
  0x56   :  { %1568 = vmatpush.bf16.msra.mxu0 %v2825_v42  ;;  %v2886_v25 = vld [vmem:[#allocation2 + $0x250] sm:$0xf0]  ;;  %v3946_v26 = vld [vmem:[#allocation2 + $0x344] sm:$0xf]  ;;  %v2761_v30 = vor.u32 %v3882_v17, %v2758_v21 }
  0x57   :  { %1581 = vmatpush.bf16.msra.mxu1 %v2953_v43  ;;  %v3014_v27 = vld [vmem:[#allocation2 + $0x350] sm:$0xf0]  ;;  %v3978_v28 = vld [vmem:[#allocation2 + $0x444] sm:$0xf]  ;;  %v2889_v31 = vor.u32 %v3914_v23, %v2886_v25 }
  0x58   :  { %1594 = vmatpush.bf16.msra.mxu2 %v3081_v44  ;;  %v3142_v29 = vld [vmem:[#allocation2 + $0x450] sm:$0xf0]  ;;  %v3017_v32 = vor.u32 %v3946_v26, %v3014_v27  ;;  %v3878_v33 = vld [vmem:[#allocation2 + $0x124] sm:$0xf] }
  0x59   :  { %1607 = vmatpush.bf16.msra.mxu3 %v3209_v48  ;;  %v2742_v34 = vld [vmem:[#allocation2 + $0x130] sm:$0xf0]  ;;  %v3910_v35 = vld [vmem:[#allocation2 + $0x224] sm:$0xf]  ;;  %v3145_v36 = vor.u32 %v3978_v28, %v3142_v29  ;;  %v2684_v29 = vld [vmem:[#allocation2 + $0xa8] sm:$0xf] }
  0x5a   :  { %1569 = vmatpush.bf16.msra.mxu0 %v2809_v54  ;;  %v2870_v38 = vld [vmem:[#allocation2 + $0x230] sm:$0xf0]  ;;  %v3942_v39 = vld [vmem:[#allocation2 + $0x324] sm:$0xf]  ;;  %v2745_v45 = vor.u32 %v3878_v33, %v2742_v34 }
  0x5b   :  { %1582 = vmatpush.bf16.msra.mxu1 %v2937_v55  ;;  %v2998_v42 = vld [vmem:[#allocation2 + $0x330] sm:$0xf0]  ;;  %v3974_v43 = vld [vmem:[#allocation2 + $0x424] sm:$0xf]  ;;  %v2873_v48 = vor.u32 %v3910_v35, %v2870_v38 }
  0x5c   :  { %1595 = vmatpush.bf16.msra.mxu2 %v3065_v56  ;;  %v3126_v44 = vld [vmem:[#allocation2 + $0x430] sm:$0xf0]  ;;  %v3874_v46 = vld [vmem:[#allocation2 + $0x104] sm:$0xf]  ;;  %v3001_v49 = vor.u32 %v3942_v39, %v2998_v42 }
  0x5d   :  { %1608 = vmatpush.bf16.msra.mxu3 %v3193_v60  ;;  %v2726_v47 = vld [vmem:[#allocation2 + $0x110] sm:$0xf0]  ;;  %v3906_v50 = vld [vmem:[#allocation2 + $0x204] sm:$0xf]  ;;  %v3129_v53 = vor.u32 %v3974_v43, %v3126_v44  ;;  %v2668_v44 = vld [vmem:[#allocation2 + $0x88] sm:$0xf] }
  0x5e   :  { %1570 = vmatpush.bf16.msra.mxu0 %v2793_v2  ;;  %v2854_v51 = vld [vmem:[#allocation2 + $0x210] sm:$0xf0]  ;;  %v3938_v52 = vld [vmem:[#allocation2 + $0x304] sm:$0xf]  ;;  %v2729_v60 = vor.u32 %v3874_v46, %v2726_v47  ;;  %v2844_v2 = vld [vmem:[#allocation2 + $0x1e8] sm:$0xf] }
  0x5f   :  { %1583 = vmatpush.bf16.msra.mxu1 %v2921_v3  ;;  %v2982_v54 = vld [vmem:[#allocation2 + $0x310] sm:$0xf0]  ;;  %v3970_v55 = vld [vmem:[#allocation2 + $0x404] sm:$0xf]  ;;  %v2857_v0 = vor.u32 %v3906_v50, %v2854_v51  ;;  %v3905_v3 = vld [vmem:[#allocation2 + $0x1f4] sm:$0xf0] }
  0x60   :  { %1596 = vmatpush.bf16.msra.mxu2 %v3049_v4  ;;  %v3110_v56 = vld [vmem:[#allocation2 + $0x410] sm:$0xf0]  ;;  %v4030_v57 = vld [vmem:[#allocation2 + $0x5e4] sm:$0xf]  ;;  %v2985_v1 = vor.u32 %v3938_v52, %v2982_v54  ;;  %v2845_v11 = vor.u32 %v3905_v3, %v2844_v2  ;;  %v2796_v46 = vld [vmem:[#allocation2 + $0x188] sm:$0xf] }
  0x61   :  { %1609 = vmatpush.bf16.msra.mxu3 %v3177_v8  ;;  %v3350_v58 = vld [vmem:[#allocation2 + $0x5f0] sm:$0xf0]  ;;  %v4062_v59 = vld [vmem:[#allocation2 + $0x6e4] sm:$0xf]  ;;  %v3113_v4 = vor.u32 %v3970_v55, %v3110_v56  ;;  %v3893_v47 = vld [vmem:[#allocation2 + $0x194] sm:$0xf0] }
  0x62   :  { %1571 = vmatpush.bf16.msra.mxu0 %v2777_v14  ;;  %v3478_v61 = vld [vmem:[#allocation2 + $0x6f0] sm:$0xf0]  ;;  %v3353_v5 = vor.u32 %v4030_v57, %v3350_v58  ;;  %v4026_v8 = vld [vmem:[#allocation2 + $0x5c4] sm:$0xf]  ;;  %v3869_v14 = vld [vmem:[#allocation2 + $0xd4] sm:$0xf0]  ;;  %v2797_v54 = vor.u32 %v3893_v47, %v2796_v46 }
  0x63   :  { %1584 = vmatpush.bf16.msra.mxu1 %v2905_v15  ;;  %v3481_v6 = vor.u32 %v4062_v59, %v3478_v61  ;;  %v3334_v9 = vld [vmem:[#allocation2 + $0x5d0] sm:$0xf0]  ;;  %v4058_v10 = vld [vmem:[#allocation2 + $0x6c4] sm:$0xf]  ;;  %v2828_v15 = vld [vmem:[#allocation2 + $0x1c8] sm:$0xf]  ;;  %v2701_v23 = vor.u32 %v3869_v14, %v2700_v13 }
  0x64   :  { %1597 = vmatpush.bf16.msra.mxu2 %v3033_v16  ;;  %v3462_v12 = vld [vmem:[#allocation2 + $0x6d0] sm:$0xf0]  ;;  %v3901_v16 = vld [vmem:[#allocation2 + $0x1d4] sm:$0xf0]  ;;  %v3337_v17 = vor.u32 %v4026_v8, %v3334_v9  ;;  %v4054_v26 = vld [vmem:[#allocation2 + $0x6a4] sm:$0xf] }
  0x65   :  { %1610 = vmatpush.bf16.msra.mxu3 %v3161_v24  ;;  %v3465_v21 = vor.u32 %v4058_v10, %v3462_v12  ;;  %v4022_v24 = vld [vmem:[#allocation2 + $0x5a4] sm:$0xf]  ;;  %v3318_v25 = vld [vmem:[#allocation2 + $0x5b0] sm:$0xf0]  ;;  %v2829_v27 = vor.u32 %v3901_v16, %v2828_v15  ;;  %v2652_v56 = vld [vmem:[#allocation2 + $0x68] sm:$0xf] }
  0x66   :  { %1572 = vmatpush.bf16.msra.mxu0 %v2761_v30  ;;  %v3446_v28 = vld [vmem:[#allocation2 + $0x6b0] sm:$0xf0]  ;;  %v3865_v30 = vld [vmem:[#allocation2 + $0xb4] sm:$0xf0]  ;;  %v3321_v33 = vor.u32 %v4022_v24, %v3318_v25  ;;  %v4050_v39 = vld [vmem:[#allocation2 + $0x684] sm:$0xf] }
  0x67   :  { %1585 = vmatpush.bf16.msra.mxu1 %v2889_v31  ;;  %v2812_v31 = vld [vmem:[#allocation2 + $0x1a8] sm:$0xf]  ;;  %v3449_v34 = vor.u32 %v4054_v26, %v3446_v28  ;;  %v2685_v35 = vor.u32 %v3865_v30, %v2684_v29  ;;  %v3302_v38 = vld [vmem:[#allocation2 + $0x590] sm:$0xf0]  ;;  %v4014_v51 = vld [vmem:[#allocation2 + $0x564] sm:$0xf] }
  0x68   :  { %1598 = vmatpush.bf16.msra.mxu2 %v3017_v32  ;;  %v3897_v32 = vld [vmem:[#allocation2 + $0x1b4] sm:$0xf0]  ;;  %v3430_v43 = vld [vmem:[#allocation2 + $0x690] sm:$0xf0]  ;;  %v2780_v58 = vld [vmem:[#allocation2 + $0x168] sm:$0xf] }
  0x69   :  { %1611 = vmatpush.bf16.msra.mxu3 %v3145_v36  ;;  %v4018_v36 = vld [vmem:[#allocation2 + $0x584] sm:$0xf]  ;;  %v2813_v42 = vor.u32 %v3897_v32, %v2812_v31  ;;  %v3286_v52 = vld [vmem:[#allocation2 + $0x570] sm:$0xf0]  ;;  %v3857_v57 = vld [vmem:[#allocation2 + $0x74] sm:$0xf0] }
  0x6a   :  { %1573 = vmatpush.bf16.msra.mxu0 %v2745_v45  ;;  %v3861_v45 = vld [vmem:[#allocation2 + $0x94] sm:$0xf0]  ;;  %v3414_v55 = vld [vmem:[#allocation2 + $0x670] sm:$0xf0]  ;;  %v2653_v62 = vor.u32 %v3857_v57, %v2652_v56  ;;  %v4010_v63 = vld [vmem:[#allocation2 + $0x544] sm:$0xf] }
  0x6b   :  { %1586 = vmatpush.bf16.msra.mxu1 %v2873_v48  ;;  %v3305_v48 = vor.u32 %v4018_v36, %v3302_v38  ;;  %v2669_v50 = vor.u32 %v3861_v45, %v2668_v44  ;;  %v3889_v59 = vld [vmem:[#allocation2 + $0x174] sm:$0xf0]  ;;  %v3398_v3 = vld [vmem:[#allocation2 + $0x650] sm:$0xf0]  ;;  %v4038_v13 = vld [vmem:[#allocation2 + $0x624] sm:$0xf] }
  0x6c   :  { %1599 = vmatpush.bf16.msra.mxu2 %v3001_v49  ;;  %v3433_v49 = vor.u32 %v4050_v39, %v3430_v43  ;;  %v2781_v2 = vor.u32 %v3889_v59, %v2780_v58  ;;  %v3254_v12 = vld [vmem:[#allocation2 + $0x530] sm:$0xf0]  ;;  %v2620_v16 = vld [vmem:[#allocation2 + $0x28] sm:$0xf]  ;;  %v4002_v25 = vld [vmem:[#allocation2 + $0x504] sm:$0xf] }
  0x6d   :  { %1612 = vmatpush.bf16.msra.mxu3 %v3129_v53  ;;  %v4046_v53 = vld [vmem:[#allocation2 + $0x664] sm:$0xf]  ;;  %v3382_v15 = vld [vmem:[#allocation2 + $0x630] sm:$0xf0]  ;;  %v2604_v31 = vld [vmem:[#allocation2 + $0x8] sm:$0xf] }
  0x6e   :  { %1574 = vmatpush.bf16.msra.mxu0 %v2729_v60  ;;  %v3289_v60 = vor.u32 %v4014_v51, %v3286_v52  ;;  %v3417_v61 = vor.u32 %v4046_v53, %v3414_v55  ;;  %v3238_v26 = vld [vmem:[#allocation2 + $0x510] sm:$0xf0]  ;;  %v4034_v29 = vld [vmem:[#allocation2 + $0x604] sm:$0xf]  ;;  %v2972_v36 = vld [vmem:[#allocation2 + $0x2e8] sm:$0xf] }
  0x6f   :  { %1587 = vmatpush.bf16.msra.mxu1 %v2857_v0  ;;  %v3270_v0 = vld [vmem:[#allocation2 + $0x550] sm:$0xf0]  ;;  %v3937_v38 = vld [vmem:[#allocation2 + $0x2f4] sm:$0xf0]  ;;  %v3100_v39 = vld [vmem:[#allocation2 + $0x3e8] sm:$0xf] }
  0x70   :  { %1600 = vmatpush.bf16.msra.mxu2 %v2985_v1  ;;  %v4042_v1 = vld [vmem:[#allocation2 + $0x644] sm:$0xf]  ;;  %v3273_v8 = vor.u32 %v4010_v63, %v3270_v0  ;;  %v3366_v30 = vld [vmem:[#allocation2 + $0x610] sm:$0xf0]  ;;  %v3969_v43 = vld [vmem:[#allocation2 + $0x3f4] sm:$0xf0]  ;;  %v2973_v51 = vor.u32 %v3937_v38, %v2972_v36 }
  0x71   :  { %1613 = vmatpush.bf16.msra.mxu3 %v3113_v4  ;;  %1575 = vmatmul.bf16.vlgmr.msra.gmra.mxu0 %v4349_v22  ;;  %v2636_v4 = vld [vmem:[#allocation2 + $0x48] sm:$0xf]  ;;  %v3401_v9 = vor.u32 %v4042_v1, %v3398_v3  ;;  %v4001_v45 = vld [vmem:[#allocation2 + $0x4f4] sm:$0xf0]  ;;  %v3369_v46 = vor.u32 %v4034_v29, %v3366_v30  ;;  %v3101_v52 = vor.u32 %v3969_v43, %v3100_v39 }
  0x72   :  { %1619 = vmatpush.bf16.msrb.mxu0 %v3353_v5  ;;  %1588 = vmatmul.bf16.vlgmr.msra.gmra.mxu1 %v4343_v18  ;;  %v3853_v5 = vld [vmem:[#allocation2 + $0x54] sm:$0xf0]  ;;  %v3228_v44 = vld [vmem:[#allocation2 + $0x4e8] sm:$0xf] }
  0x73   :  { %1632 = vmatpush.bf16.msrb.mxu1 %v3481_v6  ;;  %1601 = vmatmul.bf16.vlgmr.msra.gmra.mxu2 %v4347_v20  ;;  %v2764_v6 = vld [vmem:[#allocation2 + $0x148] sm:$0xf]  ;;  %v2637_v10 = vor.u32 %v3853_v5, %v2636_v4  ;;  %v3229_v53 = vor.u32 %v4001_v45, %v3228_v44  ;;  %v3933_v55 = vld [vmem:[#allocation2 + $0x2d4] sm:$0xf0] }
  0x74   :  { %1645 = vmatpush.bf16.msrb.mxu2 %v2717_v7  ;;  %1614 = vmatmul.bf16.vlgmr.msra.gmra.mxu3 %v4363_v40  ;;  %v3885_v7 = vld [vmem:[#allocation2 + $0x154] sm:$0xf0]  ;;  %v3084_v56 = vld [vmem:[#allocation2 + $0x3c8] sm:$0xf] }
  0x75   :  { %1658 = vmatpush.bf16.msrb.mxu3 %v2845_v11  ;;  %v4006_v11 = vld [vmem:[#allocation2 + $0x524] sm:$0xf]  ;;  %v2765_v14 = vor.u32 %v3885_v7, %v2764_v6  ;;  %v3965_v58 = vld [vmem:[#allocation2 + $0x3d4] sm:$0xf0]  ;;  %v3212_v59 = vld [vmem:[#allocation2 + $0x4c8] sm:$0xf] }
  0x76   :  { %1620 = vmatpush.bf16.msrb.mxu0 %v3337_v17  ;;  %v3849_v17 = vld [vmem:[#allocation2 + $0x34] sm:$0xf0]  ;;  %v3257_v24 = vor.u32 %v4006_v11, %v3254_v12  ;;  %v3085_v0 = vor.u32 %v3965_v58, %v3084_v56  ;;  %v3068_v4 = vld [vmem:[#allocation2 + $0x3a8] sm:$0xf] }
  0x77   :  { %1633 = vmatpush.bf16.msrb.mxu1 %v3465_v21  ;;  %v2748_v21 = vld [vmem:[#allocation2 + $0x128] sm:$0xf]  ;;  %v2621_v28 = vor.u32 %v3849_v17, %v2620_v16  ;;  %v3929_v3 = vld [vmem:[#allocation2 + $0x2b4] sm:$0xf0] }
  0x78   :  { %1646 = vmatpush.bf16.msrb.mxu2 %v2701_v23  ;;  %v3881_v23 = vld [vmem:[#allocation2 + $0x134] sm:$0xf0]  ;;  %v3196_v7 = vld [vmem:[#allocation2 + $0x4a8] sm:$0xf] }
  0x79   :  { %1659 = vmatpush.bf16.msrb.mxu3 %v2829_v27  ;;  %v3385_v27 = vor.u32 %v4038_v13, %v3382_v15  ;;  %v2749_v32 = vor.u32 %v3881_v23, %v2748_v21  ;;  %v3961_v6 = vld [vmem:[#allocation2 + $0x3b4] sm:$0xf0]  ;;  %v3052_v16 = vld [vmem:[#allocation2 + $0x388] sm:$0xf] }
  0x7a   :  { %1621 = vmatpush.bf16.msrb.mxu0 %v3321_v33  ;;  %v3845_v33 = vld [vmem:[#allocation2 + $0x14] sm:$0xf0]  ;;  %v3069_v12 = vor.u32 %v3961_v6, %v3068_v4  ;;  %v3180_v23 = vld [vmem:[#allocation2 + $0x488] sm:$0xf] }
  0x7b   :  { %1634 = vmatpush.bf16.msrb.mxu1 %v3449_v34  ;;  %v2732_v34 = vld [vmem:[#allocation2 + $0x108] sm:$0xf]  ;;  %v2605_v47 = vor.u32 %v3845_v33, %v2604_v31  ;;  %v3925_v15 = vld [vmem:[#allocation2 + $0x294] sm:$0xf0] }
  0x7c   :  { %1647 = vmatpush.bf16.msrb.mxu2 %v2685_v35  ;;  %v3877_v35 = vld [vmem:[#allocation2 + $0x114] sm:$0xf0]  ;;  %v2908_v30 = vld [vmem:[#allocation2 + $0x268] sm:$0xf] }
  0x7d   :  { %1660 = vmatpush.bf16.msrb.mxu3 %v2813_v42  ;;  %v3241_v42 = vor.u32 %v4002_v25, %v3238_v26  ;;  %v3957_v21 = vld [vmem:[#allocation2 + $0x394] sm:$0xf0]  ;;  %v3308_v25 = vld [vmem:[#allocation2 + $0x588] sm:$0xf] }
  0x7e   :  { %1622 = vmatpush.bf16.msrb.mxu0 %v3305_v48  ;;  %v3356_v48 = vld [vmem:[#allocation2 + $0x5e8] sm:$0xf]  ;;  %v4021_v26 = vld [vmem:[#allocation2 + $0x594] sm:$0xf0] }
  0x7f   :  { %1635 = vmatpush.bf16.msrb.mxu1 %v3433_v49  ;;  %v4033_v49 = vld [vmem:[#allocation2 + $0x5f4] sm:$0xf0]  ;;  %v3309_v33 = vor.u32 %v4021_v26, %v3308_v25  ;;  %v3292_v38 = vld [vmem:[#allocation2 + $0x568] sm:$0xf] }
  0x80   :  { %1648 = vmatpush.bf16.msrb.mxu2 %v2669_v50  ;;  %v2733_v50 = vor.u32 %v3877_v35, %v2732_v34  ;;  %v3357_v57 = vor.u32 %v4033_v49, %v3356_v48  ;;  %v3921_v31 = vld [vmem:[#allocation2 + $0x274] sm:$0xf0]  ;;  %v3164_v35 = vld [vmem:[#allocation2 + $0x468] sm:$0xf] }
  0x81   :  { %1661 = vmatpush.bf16.msrb.mxu3 %v2797_v54  ;;  %v2956_v54 = vld [vmem:[#allocation2 + $0x2c8] sm:$0xf]  ;;  %v3953_v34 = vld [vmem:[#allocation2 + $0x374] sm:$0xf0] }
  0x82   :  { %1623 = vmatpush.bf16.msrb.mxu0 %v3289_v60  ;;  %v3997_v60 = vld [vmem:[#allocation2 + $0x4d4] sm:$0xf0]  ;;  %v2957_v63 = vor.u32 %v3933_v55, %v2956_v54  ;;  %v2892_v45 = vld [vmem:[#allocation2 + $0x248] sm:$0xf] }
  0x83   :  { %1636 = vmatpush.bf16.msrb.mxu1 %v3417_v61  ;;  %v3340_v61 = vld [vmem:[#allocation2 + $0x5c8] sm:$0xf]  ;;  %v3213_v1 = vor.u32 %v3997_v60, %v3212_v59  ;;  %v3985_v36 = vld [vmem:[#allocation2 + $0x474] sm:$0xf0] }
  0x84   :  { %1649 = vmatpush.bf16.msrb.mxu2 %v2653_v62  ;;  %v4029_v62 = vld [vmem:[#allocation2 + $0x5d4] sm:$0xf0]  ;;  %v3165_v44 = vor.u32 %v3985_v36, %v3164_v35  ;;  %v3004_v59 = vld [vmem:[#allocation2 + $0x328] sm:$0xf]  ;;  %v3867_v35 = vld [vmem:[#allocation2 + $0xcc] sm:$0xf] }
  0x85   :  { %1662 = vmatpush.bf16.msrb.mxu3 %v2781_v2  ;;  %v2940_v2 = vld [vmem:[#allocation2 + $0x2a8] sm:$0xf]  ;;  %v3341_v5 = vor.u32 %v4029_v62, %v3340_v61  ;;  %v4017_v39 = vld [vmem:[#allocation2 + $0x574] sm:$0xf0] }
  0x86   :  { %1624 = vmatpush.bf16.msrb.mxu0 %v3273_v8  ;;  %v3993_v8 = vld [vmem:[#allocation2 + $0x4b4] sm:$0xf0]  ;;  %v2941_v11 = vor.u32 %v3929_v3, %v2940_v2  ;;  %v3293_v48 = vor.u32 %v4017_v39, %v3292_v38  ;;  %v3132_v62 = vld [vmem:[#allocation2 + $0x428] sm:$0xf]  ;;  %v2702_v38 = vld [vmem:[#allocation2 + $0xd8] sm:$0xf0] }
  0x87   :  { %1637 = vmatpush.bf16.msrb.mxu1 %v3401_v9  ;;  %v3324_v9 = vld [vmem:[#allocation2 + $0x5a8] sm:$0xf]  ;;  %v3197_v13 = vor.u32 %v3993_v8, %v3196_v7  ;;  %v3949_v49 = vld [vmem:[#allocation2 + $0x354] sm:$0xf0]  ;;  %v3899_v39 = vld [vmem:[#allocation2 + $0x1cc] sm:$0xf] }
  0x88   :  { %1650 = vmatpush.bf16.msrb.mxu2 %v2637_v10  ;;  %v4025_v10 = vld [vmem:[#allocation2 + $0x5b4] sm:$0xf0]  ;;  %v2860_v3 = vld [vmem:[#allocation2 + $0x208] sm:$0xf] }
  0x89   :  { %1663 = vmatpush.bf16.msrb.mxu3 %v2765_v14  ;;  %v2924_v14 = vld [vmem:[#allocation2 + $0x288] sm:$0xf]  ;;  %v3325_v17 = vor.u32 %v4025_v10, %v3324_v9  ;;  %v3913_v58 = vld [vmem:[#allocation2 + $0x234] sm:$0xf0] }
  0x8a   :  { %1625 = vmatpush.bf16.msrb.mxu0 %v3257_v24  ;;  %v3989_v24 = vld [vmem:[#allocation2 + $0x494] sm:$0xf0]  ;;  %v2988_v7 = vld [vmem:[#allocation2 + $0x308] sm:$0xf] }
  0x8b   :  { %1638 = vmatpush.bf16.msrb.mxu1 %v3385_v27  ;;  %v2925_v27 = vor.u32 %v3925_v15, %v2924_v14  ;;  %v3181_v29 = vor.u32 %v3989_v24, %v3180_v23  ;;  %v3945_v61 = vld [vmem:[#allocation2 + $0x334] sm:$0xf0]  ;;  %v3116_v9 = vld [vmem:[#allocation2 + $0x408] sm:$0xf]  ;;  %v3903_v23 = vld [vmem:[#allocation2 + $0x1ec] sm:$0xf] }
  0x8c   :  { %1651 = vmatpush.bf16.msrb.mxu2 %v2621_v28  ;;  %v3053_v28 = vor.u32 %v3957_v21, %v3052_v16  ;;  %v3909_v4 = vld [vmem:[#allocation2 + $0x214] sm:$0xf0]  ;;  %v3484_v14 = vld [vmem:[#allocation2 + $0x6e8] sm:$0xf]  ;;  %v3871_v16 = vld [vmem:[#allocation2 + $0xec] sm:$0xf] }
  0x8d   :  { %1664 = vmatpush.bf16.msrb.mxu3 %v2749_v32  ;;  %v3036_v32 = vld [vmem:[#allocation2 + $0x368] sm:$0xf]  ;;  %v3941_v8 = vld [vmem:[#allocation2 + $0x314] sm:$0xf0]  ;;  %v2718_v21 = vld [vmem:[#allocation2 + $0xf8] sm:$0xf0] }
  0x8e   :  { %1626 = vmatpush.bf16.msrb.mxu0 %v3241_v42  ;;  %v2909_v42 = vor.u32 %v3921_v31, %v2908_v30  ;;  %v3037_v43 = vor.u32 %v3953_v34, %v3036_v32  ;;  %v4065_v15 = vld [vmem:[#allocation2 + $0x6f4] sm:$0xf0]  ;;  %v2846_v24 = vld [vmem:[#allocation2 + $0x1f8] sm:$0xf0]  ;;  %v2989_v25 = vor.u32 %v3941_v8, %v2988_v7  ;;  %v2721_v31 = vor.u32 %v3871_v16, %v2718_v21  ;;  %v3420_v8 = vld [vmem:[#allocation2 + $0x668] sm:$0xf] }
  0x8f   :  { %1639 = vmatpush.bf16.msrb.mxu1 %v3369_v46  ;;  %v3917_v46 = vld [vmem:[#allocation2 + $0x254] sm:$0xf0]  ;;  %v3485_v30 = vor.u32 %v4065_v15, %v3484_v14  ;;  %v2849_v32 = vor.u32 %v3903_v23, %v2846_v24  ;;  %v2782_v14 = vld [vmem:[#allocation2 + $0x178] sm:$0xf0]  ;;  %v3919_v15 = vld [vmem:[#allocation2 + $0x26c] sm:$0xf] }
  0x90   :  { %1652 = vmatpush.bf16.msrb.mxu2 %v2605_v47  ;;  %v3020_v47 = vld [vmem:[#allocation2 + $0x348] sm:$0xf]  ;;  %v2893_v54 = vor.u32 %v3917_v46, %v2892_v45  ;;  %v4061_v34 = vld [vmem:[#allocation2 + $0x6d4] sm:$0xf0]  ;;  %v2705_v46 = vor.u32 %v3867_v35, %v2702_v38  ;;  %v2910_v16 = vld [vmem:[#allocation2 + $0x278] sm:$0xf0] }
  0x91   :  { %1665 = vmatpush.bf16.msrb.mxu3 %v2733_v50  ;;  %1627 = vmatmul.bf16.vlgmr.msrb.gmra.mxu0 %v4365_v41  ;;  %v3148_v50 = vld [vmem:[#allocation2 + $0x448] sm:$0xf]  ;;  %v3021_v55 = vor.u32 %v3949_v49, %v3020_v47  ;;  %v4057_v49 = vld [vmem:[#allocation2 + $0x6b4] sm:$0xf0] }
  0x92   :  { %1671 = vmatpush.bf16.msra.mxu0 %v2973_v51  ;;  %1640 = vmatmul.bf16.vlgmr.msrb.gmra.mxu1 %v4361_v37  ;;  %v3981_v51 = vld [vmem:[#allocation2 + $0x454] sm:$0xf0]  ;;  %v3404_v24 = vld [vmem:[#allocation2 + $0x648] sm:$0xf] }
  0x93   :  { %1684 = vmatpush.bf16.msra.mxu1 %v3101_v52  ;;  %1653 = vmatmul.bf16.vlgmr.msrb.gmra.mxu2 %v4345_v19  ;;  %v3276_v52 = vld [vmem:[#allocation2 + $0x548] sm:$0xf]  ;;  %v3149_v56 = vor.u32 %v3981_v51, %v3148_v50  ;;  %v3863_v50 = vld [vmem:[#allocation2 + $0xac] sm:$0xf] }
  0x94   :  { %1697 = vmatpush.bf16.msra.mxu2 %v3229_v53  ;;  %1666 = vmatmul.bf16.vlgmr.msrb.gmra.mxu3 %v4349_v22  ;;  %v4013_v53 = vld [vmem:[#allocation2 + $0x554] sm:$0xf0]  ;;  %v3388_v38 = vld [vmem:[#allocation2 + $0x628] sm:$0xf] }
  0x95   :  { %1710 = vmatpush.bf16.msra.mxu3 %v3357_v57  ;;  %v2876_v57 = vld [vmem:[#allocation2 + $0x228] sm:$0xf]  ;;  %v3277_v60 = vor.u32 %v4013_v53, %v3276_v52  ;;  %v2686_v52 = vld [vmem:[#allocation2 + $0xb8] sm:$0xf0]  ;;  %v3895_v53 = vld [vmem:[#allocation2 + $0x1ac] sm:$0xf] }
  0x96   :  { %1672 = vmatpush.bf16.msra.mxu0 %v2957_v63  ;;  %v3977_v63 = vld [vmem:[#allocation2 + $0x434] sm:$0xf0]  ;;  %v2877_v2 = vor.u32 %v3913_v58, %v2876_v57  ;;  %v2689_v58 = vor.u32 %v3863_v50, %v2686_v52 }
  0x97   :  { %1685 = vmatpush.bf16.msra.mxu1 %v3085_v0  ;;  %v3260_v0 = vld [vmem:[#allocation2 + $0x528] sm:$0xf]  ;;  %v3133_v6 = vor.u32 %v3977_v63, %v3132_v62  ;;  %v3859_v62 = vld [vmem:[#allocation2 + $0x8c] sm:$0xf]  ;;  %v4037_v52 = vld [vmem:[#allocation2 + $0x614] sm:$0xf0] }
  0x98   :  { %1698 = vmatpush.bf16.msra.mxu2 %v3213_v1  ;;  %v4009_v1 = vld [vmem:[#allocation2 + $0x534] sm:$0xf0] }
  0x99   :  { %1711 = vmatpush.bf16.msra.mxu3 %v3341_v5  ;;  %v3005_v5 = vor.u32 %v3945_v61, %v3004_v59  ;;  %v3261_v10 = vor.u32 %v4009_v1, %v3260_v0  ;;  %v4053_v61 = vld [vmem:[#allocation2 + $0x694] sm:$0xf0]  ;;  %v2670_v0 = vld [vmem:[#allocation2 + $0x98] sm:$0xf0]  ;;  %v3891_v1 = vld [vmem:[#allocation2 + $0x18c] sm:$0xf] }
  0x9a   :  { %1673 = vmatpush.bf16.msra.mxu0 %v2941_v11  ;;  %v3973_v11 = vld [vmem:[#allocation2 + $0x414] sm:$0xf0] }
  0x9b   :  { %1686 = vmatpush.bf16.msra.mxu1 %v3069_v12  ;;  %v3244_v12 = vld [vmem:[#allocation2 + $0x508] sm:$0xf]  ;;  %v3117_v26 = vor.u32 %v3973_v11, %v3116_v9  ;;  %v4049_v9 = vld [vmem:[#allocation2 + $0x674] sm:$0xf0] }
  0x9c   :  { %1699 = vmatpush.bf16.msra.mxu2 %v3197_v13  ;;  %v4005_v13 = vld [vmem:[#allocation2 + $0x514] sm:$0xf0] }
  0x9d   :  { %1712 = vmatpush.bf16.msra.mxu3 %v3325_v17  ;;  %v2861_v17 = vor.u32 %v3909_v4, %v2860_v3  ;;  %v3923_v3 = vld [vmem:[#allocation2 + $0x28c] sm:$0xf]  ;;  %v2926_v4 = vld [vmem:[#allocation2 + $0x298] sm:$0xf0] }
  0x9e   :  { %1674 = vmatpush.bf16.msra.mxu0 %v2925_v27  ;;  %v3935_v27 = vld [vmem:[#allocation2 + $0x2ec] sm:$0xf]  ;;  %v2929_v11 = vor.u32 %v3923_v3, %v2926_v4  ;;  %v3230_v4 = vld [vmem:[#allocation2 + $0x4f8] sm:$0xf0] }
  0x9f   :  { %1687 = vmatpush.bf16.msra.mxu1 %v3053_v28  ;;  %v2974_v28 = vld [vmem:[#allocation2 + $0x2f8] sm:$0xf0] }
  0xa0   :  { %1700 = vmatpush.bf16.msra.mxu2 %v3181_v29  ;;  %v3245_v29 = vor.u32 %v4005_v13, %v3244_v12  ;;  %v2977_v36 = vor.u32 %v3935_v27, %v2974_v28  ;;  %v2654_v12 = vld [vmem:[#allocation2 + $0x78] sm:$0xf0]  ;;  %v3887_v13 = vld [vmem:[#allocation2 + $0x16c] sm:$0xf]  ;;  %v2913_v27 = vor.u32 %v3919_v15, %v2910_v16 }
  0xa1   :  { %1713 = vmatpush.bf16.msra.mxu3 %v3309_v33  ;;  %v3468_v33 = vld [vmem:[#allocation2 + $0x6c8] sm:$0xf]  ;;  %v2785_v23 = vor.u32 %v3887_v13, %v2782_v14  ;;  %v2638_v28 = vld [vmem:[#allocation2 + $0x58] sm:$0xf0] }
  0xa2   :  { %1675 = vmatpush.bf16.msra.mxu0 %v2909_v42  ;;  %v2830_v42 = vld [vmem:[#allocation2 + $0x1d8] sm:$0xf0]  ;;  %v3469_v45 = vor.u32 %v4061_v34, %v3468_v33 }
  0xa3   :  { %1688 = vmatpush.bf16.msra.mxu1 %v3037_v43  ;;  %v3931_v43 = vld [vmem:[#allocation2 + $0x2cc] sm:$0xf]  ;;  %v2833_v47 = vor.u32 %v3899_v39, %v2830_v42  ;;  %v4041_v39 = vld [vmem:[#allocation2 + $0x634] sm:$0xf0] }
  0xa4   :  { %1701 = vmatpush.bf16.msra.mxu2 %v3165_v44  ;;  %v2958_v44 = vld [vmem:[#allocation2 + $0x2d8] sm:$0xf0]  ;;  %v3847_v42 = vld [vmem:[#allocation2 + $0x2c] sm:$0xf]  ;;  %v3389_v50 = vor.u32 %v4041_v39, %v3388_v38 }
  0xa5   :  { %1714 = vmatpush.bf16.msra.mxu3 %v3293_v48  ;;  %v3452_v48 = vld [vmem:[#allocation2 + $0x6a8] sm:$0xf]  ;;  %v2961_v51 = vor.u32 %v3931_v43, %v2958_v44  ;;  %v3070_v38 = vld [vmem:[#allocation2 + $0x3b8] sm:$0xf0]  ;;  %v3991_v39 = vld [vmem:[#allocation2 + $0x4ac] sm:$0xf] }
  0xa6   :  { %1676 = vmatpush.bf16.msra.mxu0 %v2893_v54  ;;  %v2814_v54 = vld [vmem:[#allocation2 + $0x1b8] sm:$0xf0]  ;;  %v3453_v57 = vor.u32 %v4057_v49, %v3452_v48  ;;  %v3911_v48 = vld [vmem:[#allocation2 + $0x22c] sm:$0xf] }
  0xa7   :  { %1689 = vmatpush.bf16.msra.mxu1 %v3021_v55  ;;  %v3927_v55 = vld [vmem:[#allocation2 + $0x2ac] sm:$0xf]  ;;  %v2817_v59 = vor.u32 %v3895_v53, %v2814_v54  ;;  %v2878_v49 = vld [vmem:[#allocation2 + $0x238] sm:$0xf0] }
  0xa8   :  { %1702 = vmatpush.bf16.msra.mxu2 %v3149_v56  ;;  %v2942_v56 = vld [vmem:[#allocation2 + $0x2b8] sm:$0xf0] }
  0xa9   :  { %1715 = vmatpush.bf16.msra.mxu3 %v3277_v60  ;;  %v3436_v60 = vld [vmem:[#allocation2 + $0x688] sm:$0xf]  ;;  %v2945_v63 = vor.u32 %v3927_v55, %v2942_v56  ;;  %v3843_v55 = vld [vmem:[#allocation2 + $0xc] sm:$0xf]  ;;  %v2606_v56 = vld [vmem:[#allocation2 + $0x18] sm:$0xf0] }
  0xaa   :  { %1677 = vmatpush.bf16.msra.mxu0 %v2877_v2  ;;  %v2798_v2 = vld [vmem:[#allocation2 + $0x198] sm:$0xf0] }
  0xab   :  { %1690 = vmatpush.bf16.msra.mxu1 %v3005_v5  ;;  %v3437_v5 = vor.u32 %v4053_v61, %v3436_v60  ;;  %v2801_v7 = vor.u32 %v3891_v1, %v2798_v2  ;;  %v2734_v60 = vld [vmem:[#allocation2 + $0x118] sm:$0xf0]  ;;  %v3907_v61 = vld [vmem:[#allocation2 + $0x20c] sm:$0xf] }
  0xac   :  { %1703 = vmatpush.bf16.msra.mxu2 %v3133_v6  ;;  %v2673_v6 = vor.u32 %v3859_v62, %v2670_v0  ;;  %v2862_v62 = vld [vmem:[#allocation2 + $0x218] sm:$0xf0]  ;;  %v3967_v0 = vld [vmem:[#allocation2 + $0x3ec] sm:$0xf] }
  0xad   :  { %1716 = vmatpush.bf16.msra.mxu3 %v3261_v10  ;;  %v3855_v10 = vld [vmem:[#allocation2 + $0x6c] sm:$0xf]  ;;  %v3102_v1 = vld [vmem:[#allocation2 + $0x3f8] sm:$0xf0]  ;;  %v2865_v13 = vor.u32 %v3907_v61, %v2862_v62 }
  0xae   :  { %1678 = vmatpush.bf16.msra.mxu0 %v2861_v17  ;;  %v3421_v17 = vor.u32 %v4049_v9, %v3420_v8  ;;  %v2657_v21 = vor.u32 %v3855_v10, %v2654_v12  ;;  %v3999_v2 = vld [vmem:[#allocation2 + $0x4ec] sm:$0xf]  ;;  %v2609_v8 = vor.u32 %v3843_v55, %v2606_v56  ;;  %v3105_v14 = vor.u32 %v3967_v0, %v3102_v1  ;;  %v3182_v56 = vld [vmem:[#allocation2 + $0x498] sm:$0xf0] }
  0xaf   :  { %1691 = vmatpush.bf16.msra.mxu1 %v2989_v25  ;;  %v4045_v25 = vld [vmem:[#allocation2 + $0x654] sm:$0xf0]  ;;  %v4063_v10 = vld [vmem:[#allocation2 + $0x6ec] sm:$0xf]  ;;  %v3233_v15 = vor.u32 %v3999_v2, %v3230_v4  ;;  %v3038_v2 = vld [vmem:[#allocation2 + $0x378] sm:$0xf0] }
  0xb0   :  { %1704 = vmatpush.bf16.msra.mxu2 %v3117_v26  ;;  %v3851_v26 = vld [vmem:[#allocation2 + $0x4c] sm:$0xf]  ;;  %v3405_v33 = vor.u32 %v4045_v25, %v3404_v24  ;;  %v3214_v25 = vld [vmem:[#allocation2 + $0x4d8] sm:$0xf0] }
  0xb1   :  { %1717 = vmatpush.bf16.msra.mxu3 %v3245_v29  ;;  %1679 = vmatmul.bf16.vlgmr.msra.gmra.mxu0 %v4343_v18  ;;  %v3883_v29 = vld [vmem:[#allocation2 + $0x14c] sm:$0xf]  ;;  %v2641_v35 = vor.u32 %v3851_v26, %v2638_v28 }
  0xb2   :  { %1723 = vmatpush.bf16.msrb.mxu0 %v3485_v30  ;;  %1692 = vmatmul.bf16.vlgmr.msra.gmra.mxu1 %v4347_v20  ;;  %v2766_v30 = vld [vmem:[#allocation2 + $0x158] sm:$0xf0]  ;;  %v4027_v26 = vld [vmem:[#allocation2 + $0x5cc] sm:$0xf] }
  0xb3   :  { %1736 = vmatpush.bf16.msrb.mxu1 %v2721_v31  ;;  %1705 = vmatmul.bf16.vlgmr.msra.gmra.mxu2 %v4363_v40  ;;  %v3915_v31 = vld [vmem:[#allocation2 + $0x24c] sm:$0xf] }
  0xb4   :  { %1749 = vmatpush.bf16.msrb.mxu2 %v2849_v32  ;;  %1718 = vmatmul.bf16.vlgmr.msra.gmra.mxu3 %v4365_v41  ;;  %v2894_v32 = vld [vmem:[#allocation2 + $0x258] sm:$0xf0]  ;;  %v4059_v28 = vld [vmem:[#allocation2 + $0x6cc] sm:$0xf] }
  0xb5   :  { %1762 = vmatpush.bf16.msrb.mxu3 %v2977_v36  ;;  %v2769_v36 = vor.u32 %v3883_v29, %v2766_v30  ;;  %v2897_v44 = vor.u32 %v3915_v31, %v2894_v32  ;;  %v3470_v29 = vld [vmem:[#allocation2 + $0x6d8] sm:$0xf0]  ;;  %v3951_v1 = vld [vmem:[#allocation2 + $0x36c] sm:$0xf] }
  0xb6   :  { %1724 = vmatpush.bf16.msrb.mxu0 %v3469_v45  ;;  %v2622_v45 = vld [vmem:[#allocation2 + $0x38] sm:$0xf0] }
  0xb7   :  { %1737 = vmatpush.bf16.msrb.mxu1 %v2705_v46  ;;  %v3879_v46 = vld [vmem:[#allocation2 + $0x12c] sm:$0xf]  ;;  %v2625_v53 = vor.u32 %v3847_v42, %v2622_v45  ;;  %v3473_v42 = vor.u32 %v4059_v28, %v3470_v29  ;;  %v4406_v28 = vld [vmem:[%s4502_s2] sm:$0xf] }
  0xb8   :  { %1750 = vmatpush.bf16.msrb.mxu2 %v2833_v47  ;;  %v2750_v47 = vld [vmem:[#allocation2 + $0x138] sm:$0xf0]  ;;  %v4023_v45 = vld [vmem:[#allocation2 + $0x5ac] sm:$0xf] }
  0xb9   :  { %1763 = vmatpush.bf16.msrb.mxu3 %v2961_v51  ;;  %v3372_v51 = vld [vmem:[#allocation2 + $0x608] sm:$0xf]  ;;  %v2753_v54 = vor.u32 %v3879_v46, %v2750_v47  ;;  %v3326_v46 = vld [vmem:[#allocation2 + $0x5b8] sm:$0xf0]  ;;  %v4055_v47 = vld [vmem:[#allocation2 + $0x6ac] sm:$0xf] }
  0xba   :  { %1725 = vmatpush.bf16.msrb.mxu0 %v3453_v57  ;;  %v4383_v34 = vpop.f32.mrf.mxu0  ;;  %v3875_v57 = vld [vmem:[#allocation2 + $0x10c] sm:$0xf]  ;;  %v3373_v3 = vor.u32 %v4037_v52, %v3372_v51  ;;  %v3329_v51 = vor.u32 %v4023_v45, %v3326_v46  ;;  %v3262_v45 = vld [vmem:[#allocation2 + $0x538] sm:$0xf0] }
  0xbb   :  { %1738 = vmatpush.bf16.msrb.mxu1 %v2689_v58  ;;  %v4385_v43 = vpop.f32.mrf.mxu1  ;;  %v4387_v58 = vpop.f32.mrf.mxu2  ;;  %v2737_v9 = vor.u32 %v3875_v57, %v2734_v60  ;;  %v3955_v52 = vld [vmem:[#allocation2 + $0x38c] sm:$0xf]  ;;  %v3438_v60 = vld [vmem:[#allocation2 + $0x698] sm:$0xf0] }
  0xbc   :  { %1751 = vmatpush.bf16.msrb.mxu2 %v2817_v59  ;;  %v2881_v59 = vor.u32 %v3911_v48, %v2878_v49  ;;  %v3454_v48 = vld [vmem:[#allocation2 + $0x6b8] sm:$0xf0]  ;;  %v4019_v57 = vld [vmem:[#allocation2 + $0x58c] sm:$0xf] }
  0xbd   :  { %1764 = vmatpush.bf16.msrb.mxu3 %v2945_v63  ;;  %v4389_v63 = vpop.f32.mrf.mxu3  ;;  %v3457_v55 = vor.u32 %v4055_v47, %v3454_v48  ;;  %v4039_v46 = vld [vmem:[#allocation2 + $0x62c] sm:$0xf]  ;;  %v3390_v47 = vld [vmem:[#allocation2 + $0x638] sm:$0xf0]  ;;  %v310_v48 = vperm.slane %v4406_v28, 0 }
  0xbe   :  { %1726 = vmatpush.bf16.msrb.mxu0 %v3437_v5  ;;  %v4031_v5 = vld [vmem:[#allocation2 + $0x5ec] sm:$0xf] }
  0xbf   :  { %1739 = vmatpush.bf16.msrb.mxu1 %v2673_v6  ;;  %v3358_v6 = vld [vmem:[#allocation2 + $0x5f8] sm:$0xf0] }
  0xc0   :  { %1752 = vmatpush.bf16.msrb.mxu2 %v2801_v7  ;;  %v3361_v16 = vor.u32 %v4031_v5, %v3358_v6  ;;  %v3166_v5 = vld [vmem:[#allocation2 + $0x478] sm:$0xf0]  ;;  %v4015_v6 = vld [vmem:[#allocation2 + $0x56c] sm:$0xf] }
  0xc1   :  { %1765 = vmatpush.bf16.msrb.mxu3 %v2929_v11  ;;  %v3486_v11 = vld [vmem:[#allocation2 + $0x6f8] sm:$0xf0] }
  0xc2   :  { %1727 = vmatpush.bf16.msrb.mxu0 %v3421_v17  ;;  %v1474_v7 = vpop.f32.mrf.mxu0  ;;  %v3963_v17 = vld [vmem:[#allocation2 + $0x3cc] sm:$0xf]  ;;  %v3489_v24 = vor.u32 %v4063_v10, %v3486_v11  ;;  %v3041_v10 = vor.u32 %v3951_v1, %v3038_v2 }
  0xc3   :  { %1740 = vmatpush.bf16.msrb.mxu1 %v2657_v21  ;;  %v1487_v12 = vpop.f32.mrf.mxu1  ;;  %v3086_v21 = vld [vmem:[#allocation2 + $0x3d8] sm:$0xf0]  ;;  %v1500_v30 = vpop.f32.mrf.mxu2 }
  0xc4   :  { %1753 = vmatpush.bf16.msrb.mxu2 %v2785_v23  ;;  %v3995_v23 = vld [vmem:[#allocation2 + $0x4cc] sm:$0xf]  ;;  %v3089_v31 = vor.u32 %v3963_v17, %v3086_v21  ;;  %v3294_v7 = vld [vmem:[#allocation2 + $0x578] sm:$0xf0] }
  0xc5   :  { %1766 = vmatpush.bf16.msrb.mxu3 %v2913_v27  ;;  %v3342_v27 = vld [vmem:[#allocation2 + $0x5d8] sm:$0xf0]  ;;  %v1513_v32 = vpop.f32.mrf.mxu3  ;;  %v3297_v12 = vor.u32 %v4015_v6, %v3294_v7 }
  0xc6   :  { %1728 = vmatpush.bf16.msrb.mxu0 %v3405_v33  ;;  %v3217_v33 = vor.u32 %v3995_v23, %v3214_v25  ;;  %v3150_v21 = vld [vmem:[#allocation2 + $0x458] sm:$0xf0]  ;;  %v4011_v23 = vld [vmem:[#allocation2 + $0x54c] sm:$0xf] }
  0xc7   :  { %1741 = vmatpush.bf16.msrb.mxu1 %v2641_v35  ;;  %v3345_v35 = vor.u32 %v4027_v26, %v3342_v27  ;;  %v4043_v25 = vld [vmem:[#allocation2 + $0x64c] sm:$0xf]  ;;  %v3406_v26 = vld [vmem:[#allocation2 + $0x658] sm:$0xf0] }
  0xc8   :  { %1754 = vmatpush.bf16.msrb.mxu2 %v2769_v36  ;;  %v3959_v36 = vld [vmem:[#allocation2 + $0x3ac] sm:$0xf] }
  0xc9   :  { %1767 = vmatpush.bf16.msrb.mxu3 %v2897_v44  ;;  %v3198_v44 = vld [vmem:[#allocation2 + $0x4b8] sm:$0xf0]  ;;  %v3073_v49 = vor.u32 %v3959_v36, %v3070_v38  ;;  %v3975_v38 = vld [vmem:[#allocation2 + $0x42c] sm:$0xf] }
  0xca   :  { %1729 = vmatpush.bf16.msrb.mxu0 %v3389_v50  ;;  %v3201_v50 = vor.u32 %v3991_v39, %v3198_v44  ;;  %v3006_v36 = vld [vmem:[#allocation2 + $0x338] sm:$0xf0]  ;;  %v3409_v39 = vor.u32 %v4043_v25, %v3406_v26  ;;  %v4007_v44 = vld [vmem:[#allocation2 + $0x52c] sm:$0xf]  ;;  %v4093_v25 = vld [vmem:[#allocation5 + $0xd4] sm:$0xf0] }
  0xcb   :  { %1742 = vmatpush.bf16.msrb.mxu1 %v2625_v53  ;;  %v3054_v53 = vld [vmem:[#allocation2 + $0x398] sm:$0xf0] }
  0xcc   :  { %1755 = vmatpush.bf16.msrb.mxu2 %v2753_v54  ;;  %v3987_v54 = vld [vmem:[#allocation2 + $0x48c] sm:$0xf] }
  0xcd   :  { %1768 = vmatpush.bf16.msrb.mxu3 %v2881_v59  ;;  %v4051_v59 = vld [vmem:[#allocation2 + $0x68c] sm:$0xf] }
  0xce   :  { %1730 = vmatpush.bf16.msrb.mxu0 %v3373_v3  ;;  %v4395_v61 = vpop.f32.mrf.mxu0  ;;  %v3983_v3 = vld [vmem:[#allocation2 + $0x46c] sm:$0xf]  ;;  %v3441_v4 = vor.u32 %v4051_v59, %v3438_v60  ;;  %v3246_v59 = vld [vmem:[#allocation2 + $0x518] sm:$0xf0] }
  0xcf   :  { %1743 = vmatpush.bf16.msrb.mxu1 %v2609_v8  ;;  %v4397_v62 = vpop.f32.mrf.mxu1  ;;  %v4047_v8 = vld [vmem:[#allocation2 + $0x66c] sm:$0xf]  ;;  %v3169_v11 = vor.u32 %v3983_v3, %v3166_v5  ;;  %v3612_v3 = vld [vmem:[#allocation5 + $0xf0] sm:$0xf] }
  0xd0   :  { %1756 = vmatpush.bf16.msrb.mxu2 %v2737_v9  ;;  %v3422_v9 = vld [vmem:[#allocation2 + $0x678] sm:$0xf0]  ;;  %v4035_v60 = vld [vmem:[#allocation2 + $0x60c] sm:$0xf] }
  0xd1   :  { %1769 = vmatpush.bf16.msrb.mxu3 %v2865_v13  ;;  %1731 = vmatmul.bf16.vlgmr.msrb.gmra.mxu0 %v4361_v37  ;;  %v3947_v13 = vld [vmem:[#allocation2 + $0x34c] sm:$0xf]  ;;  %v3425_v17 = vor.u32 %v4047_v8, %v3422_v9  ;;  %v1473_v9 = vadd.f32 %v4383_v34, %v310_v48  ;;  %v3596_v34 = vld [vmem:[#allocation5 + $0xd0] sm:$0xf] }
  0xd2   :  { %1775 = vmatpush.bf16.msra.mxu0 %v3105_v14  ;;  %1744 = vmatmul.bf16.vlgmr.msrb.gmra.mxu1 %v4345_v19  ;;  %v3185_v19 = vor.u32 %v3987_v54, %v3182_v56  ;;  %v3022_v14 = vld [vmem:[#allocation2 + $0x358] sm:$0xf0]  ;;  %v3971_v54 = vld [vmem:[#allocation2 + $0x40c] sm:$0xf] }
  0xd3   :  { %1788 = vmatpush.bf16.msra.mxu1 %v3233_v15  ;;  %1757 = vmatmul.bf16.vlgmr.msrb.gmra.mxu2 %v4349_v22  ;;  %v3310_v22 = vld [vmem:[#allocation2 + $0x598] sm:$0xf0]  ;;  %v3979_v15 = vld [vmem:[#allocation2 + $0x44c] sm:$0xf]  ;;  %v3025_v29 = vor.u32 %v3947_v13, %v3022_v14  ;;  %v3604_v13 = vld [vmem:[#allocation5 + $0xe0] sm:$0xf] }
  0xd4   :  { %1801 = vmatpush.bf16.msra.mxu2 %v3361_v16  ;;  %1770 = vmatmul.bf16.vlgmr.msrb.gmra.mxu3 %v4343_v18  ;;  %v3057_v18 = vor.u32 %v3955_v52, %v3054_v53  ;;  %v3313_v0 = vor.u32 %v4019_v57, %v3310_v22  ;;  %v3153_v32 = vor.u32 %v3979_v15, %v3150_v21  ;;  %v2990_v53 = vld [vmem:[#allocation2 + $0x318] sm:$0xf0]  ;;  %v4003_v22 = vld [vmem:[#allocation2 + $0x50c] sm:$0xf]  ;;  %v4095_v14 = vld [vmem:[#allocation5 + $0xe4] sm:$0xf0] }
  0xd5   :  { %1814 = vmatpush.bf16.msra.mxu3 %v3489_v24  ;;  %v3278_v24 = vld [vmem:[#allocation2 + $0x558] sm:$0xf0]  ;;  %v3265_v52 = vor.u32 %v4007_v44, %v3262_v45  ;;  %v3393_v57 = vor.u32 %v4039_v46, %v3390_v47  ;;  %v3249_v6 = vor.u32 %v4003_v22, %v3246_v59  ;;  %v3532_v21 = vld [vmem:[#allocation5 + $0x50] sm:$0xf]  ;;  %v3508_v45 = vld [vmem:[#allocation5 + $0x20] sm:$0xf] }
  0xd6   :  { %1776 = vmatpush.bf16.msra.mxu0 %v3089_v31  ;;  %v4399_v16 = vpop.f32.mrf.mxu2  ;;  %v1526_v30 = vpop.f32.mrf.mxu0  ;;  %v4071_v46 = vld [vmem:[#allocation5 + $0x24] sm:$0xf0]  ;;  %v3564_v22 = vld [vmem:[#allocation5 + $0x90] sm:$0xf]  ;;  %v4085_v59 = vld [vmem:[#allocation5 + $0x94] sm:$0xf0] }
  0xd7   :  { %1789 = vmatpush.bf16.msra.mxu1 %v3217_v33  ;;  %v4401_v27 = vpop.f32.mrf.mxu3  ;;  %v1539_v31 = vpop.f32.mrf.mxu1  ;;  %v3281_v33 = vor.u32 %v4011_v23, %v3278_v24  ;;  %v4077_v23 = vld [vmem:[#allocation5 + $0x54] sm:$0xf0]  ;;  %v3605_v24 = vor.u32 %v4095_v14, %v3604_v13  ;;  %v4075_v30 = vld [vmem:[#allocation5 + $0x44] sm:$0xf0]  ;;  %v3542_v14 = vld [vmem:[#allocation5 + $0x68] sm:$0xf0] }
  0xd8   :  { %1802 = vmatpush.bf16.msra.mxu2 %v3345_v35  ;;  %v3943_v35 = vld [vmem:[#allocation2 + $0x32c] sm:$0xf]  ;;  %v3533_v26 = vor.u32 %v4077_v23, %v3532_v21  ;;  %v3588_v31 = vld [vmem:[#allocation5 + $0xc0] sm:$0xf]  ;;  %v3676_v23 = vld [vmem:[#allocation5 + $0x170] sm:$0xf] }
  0xd9   :  { %1815 = vmatpush.bf16.msra.mxu3 %v3473_v42  ;;  %v3134_v42 = vld [vmem:[#allocation2 + $0x438] sm:$0xf0]  ;;  %v3606_v21 = vld [vmem:[#allocation5 + $0xe8] sm:$0xf0] }
  0xda   :  { %1777 = vmatpush.bf16.msra.mxu0 %v3073_v49  ;;  %v3009_v49 = vor.u32 %v3943_v35, %v3006_v36  ;;  %v4073_v36 = vld [vmem:[#allocation5 + $0x34] sm:$0xf0] }
  0xdb   :  { %1790 = vmatpush.bf16.msra.mxu1 %v3201_v50  ;;  %v3939_v50 = vld [vmem:[#allocation2 + $0x30c] sm:$0xf] }
  0xdc   :  { %1803 = vmatpush.bf16.msra.mxu2 %v3329_v51  ;;  %v3137_v51 = vor.u32 %v3975_v38, %v3134_v42  ;;  %v2993_v2 = vor.u32 %v3939_v50, %v2990_v53  ;;  %v4089_v42 = vld [vmem:[#allocation5 + $0xb4] sm:$0xf0]  ;;  %v4087_v50 = vld [vmem:[#allocation5 + $0xa4] sm:$0xf0] }
  0xdd   :  { %1816 = vmatpush.bf16.msra.mxu3 %v3457_v55  ;;  %v3118_v55 = vld [vmem:[#allocation2 + $0x418] sm:$0xf0] }
  0xde   :  { %1778 = vmatpush.bf16.msra.mxu0 %v3057_v18  ;;  %v1552_v56 = vpop.f32.mrf.mxu2  ;;  %v3374_v18 = vld [vmem:[#allocation2 + $0x618] sm:$0xf0]  ;;  %v3121_v5 = vor.u32 %v3971_v54, %v3118_v55  ;;  %v3500_v55 = vld [vmem:[#allocation5 + $0x10] sm:$0xf] }
  0xdf   :  { %1791 = vmatpush.bf16.msra.mxu1 %v3185_v19  ;;  %v3548_v19 = vld [vmem:[#allocation5 + $0x70] sm:$0xf]  ;;  %v1565_v1 = vpop.f32.mrf.mxu3  ;;  %v3377_v7 = vor.u32 %v4035_v60, %v3374_v18 }
  0xe0   :  { %1804 = vmatpush.bf16.msra.mxu2 %v3313_v0  ;;  %v4081_v0 = vld [vmem:[#allocation5 + $0x74] sm:$0xf0]  ;;  %v4067_v1 = vld [vmem:[#allocation5 + $0x4] sm:$0xf0] }
  0xe1   :  { %1817 = vmatpush.bf16.msra.mxu3 %v3441_v4  ;;  %v4097_v4 = vld [vmem:[#allocation5 + $0xf4] sm:$0xf0]  ;;  %v3549_v8 = vor.u32 %v4081_v0, %v3548_v19  ;;  %v3492_v0 = vld [vmem:[#allocation5] sm:$0xf] }
  0xe2   :  { %1779 = vmatpush.bf16.msra.mxu0 %v3041_v10  ;;  %v3540_v10 = vld [vmem:[#allocation5 + $0x60] sm:$0xf] }
  0xe3   :  { %1792 = vmatpush.bf16.msra.mxu1 %v3169_v11  ;;  %v4079_v11 = vld [vmem:[#allocation5 + $0x64] sm:$0xf0] }
  0xe4   :  { %1805 = vmatpush.bf16.msra.mxu2 %v3297_v12  ;;  %v3613_v12 = vor.u32 %v4097_v4, %v3612_v3  ;;  %v3541_v15 = vor.u32 %v4079_v11, %v3540_v10  ;;  %v4080_v3 = vld [vmem:[#allocation5 + $0x74] sm:$0xf]  ;;  %v3493_v11 = vor.u32 %v4067_v1, %v3492_v0  ;;  %v3510_v1 = vld [vmem:[#allocation5 + $0x28] sm:$0xf0] }
  0xe5   :  { %1818 = vmatpush.bf16.msra.mxu3 %v3425_v17  ;;  %v1486_v17 = vadd.f32 %v4385_v43, %v1473_v9  ;;  %v3524_v43 = vld [vmem:[#allocation5 + $0x40] sm:$0xf]  ;;  %v3614_v9 = vld [vmem:[#allocation5 + $0xf8] sm:$0xf0] }
  0xe6   :  { %1780 = vmatpush.bf16.msra.mxu0 %v3025_v29 }
  0xe7   :  { %1793 = vmatpush.bf16.msra.mxu1 %v3153_v32  ;;  %v1499_v29 = vadd.f32 %v4387_v58, %v1486_v17  ;;  %v4091_v32 = vld [vmem:[#allocation5 + $0xc4] sm:$0xf0]  ;;  %v4094_v17 = vld [vmem:[#allocation5 + $0xe4] sm:$0xf] }
  0xe8   :  { %1806 = vmatpush.bf16.msra.mxu2 %v3281_v33  ;;  %v3525_v33 = vor.u32 %v4075_v30, %v3524_v43  ;;  %v3589_v38 = vor.u32 %v4091_v32, %v3588_v31  ;;  %v3668_v43 = vld [vmem:[#allocation5 + $0x160] sm:$0xf]  ;;  %v4111_v30 = vld [vmem:[#allocation5 + $0x164] sm:$0xf0]  ;;  %v3534_v31 = vld [vmem:[#allocation5 + $0x58] sm:$0xf0]  ;;  %v3609_v32 = vor.u32 %v4094_v17, %v3606_v21 }
  0xe9   :  { %1819 = vmatpush.bf16.msra.mxu3 %v3409_v39  ;;  %v3580_v39 = vld [vmem:[#allocation5 + $0xb0] sm:$0xf]  ;;  %v4101_v17 = vld [vmem:[#allocation5 + $0x114] sm:$0xf0]  ;;  %v4084_v21 = vld [vmem:[#allocation5 + $0x94] sm:$0xf] }
  0xea   :  { %1781 = vmatpush.bf16.msra.mxu0 %v3009_v49  ;;  %v3581_v47 = vor.u32 %v4089_v42, %v3580_v39  ;;  %v4074_v39 = vld [vmem:[#allocation5 + $0x44] sm:$0xf]  ;;  %v3526_v42 = vld [vmem:[#allocation5 + $0x48] sm:$0xf0] }
  0xeb   :  { %1794 = vmatpush.bf16.msra.mxu1 %v3137_v51  ;;  %v311_v51 = vperm.slane %v4406_v28, 1 }
  0xec   :  { %1807 = vmatpush.bf16.msra.mxu2 %v3265_v52  ;;  %v3509_v52 = vor.u32 %v4071_v46, %v3508_v45  ;;  %v3590_v46 = vld [vmem:[#allocation5 + $0xc8] sm:$0xf0] }
  0xed   :  { %1820 = vmatpush.bf16.msra.mxu3 %v3393_v57  ;;  %v1564_v60 = vadd.f32 %v4401_v27, %v311_v51 }
  0xee   :  { %1782 = vmatpush.bf16.msra.mxu0 %v2993_v2  ;;  %v1576_v35 = vpop.f32.mrf.mxu0  ;;  %v3565_v2 = vor.u32 %v4085_v59, %v3564_v22  ;;  %v4105_v22 = vld [vmem:[#allocation5 + $0x134] sm:$0xf0] }
  0xef   :  { %1795 = vmatpush.bf16.msra.mxu1 %v3121_v5  ;;  %v3556_v5 = vld [vmem:[#allocation5 + $0x80] sm:$0xf]  ;;  %v1577_v10 = vadd.f32 %v1576_v35, %v1564_v60  ;;  %v3669_v35 = vor.u32 %v4111_v30, %v3668_v43  ;;  %v4088_v60 = vld [vmem:[#allocation5 + $0xb4] sm:$0xf]  ;;  %v4082_v30 = vld [vmem:[#allocation5 + $0x84] sm:$0xf] }
  0xf0   :  { %1808 = vmatpush.bf16.msra.mxu2 %v3249_v6  ;;  %v4083_v6 = vld [vmem:[#allocation5 + $0x84] sm:$0xf0] }
  0xf1   :  { %1821 = vmatpush.bf16.msra.mxu3 %v3377_v7  ;;  %1783 = vmatmul.bf16.vlgmr.msra.gmra.mxu0 %v4347_v20  ;;  %v3597_v20 = vor.u32 %v4093_v25, %v3596_v34  ;;  %v3557_v13 = vor.u32 %v4083_v6, %v3556_v5  ;;  %v4086_v6 = vld [vmem:[#allocation5 + $0xa4] sm:$0xf] }
  0xf2   :  { %2225 = vmatpush.bf16.msrb.mxu0 %v3549_v8  ;;  %1796 = vmatmul.bf16.vlgmr.msra.gmra.mxu1 %v4363_v40  ;;  %v1512_v40 = vadd.f32 %v4389_v63, %v1499_v29  ;;  %v3572_v63 = vld [vmem:[#allocation5 + $0xa0] sm:$0xf]  ;;  %v4096_v8 = vld [vmem:[#allocation5 + $0xf4] sm:$0xf] }
  0xf3   :  { %2238 = vmatpush.bf16.msrb.mxu1 %v3613_v12  ;;  %1809 = vmatmul.bf16.vlgmr.msra.gmra.mxu2 %v4365_v41  ;;  %v3516_v41 = vld [vmem:[#allocation5 + $0x30] sm:$0xf]  ;;  %v3573_v56 = vor.u32 %v4087_v50, %v3572_v63  ;;  %v4107_v63 = vld [vmem:[#allocation5 + $0x144] sm:$0xf0] }
  0xf4   :  { %1822 = vmatmul.bf16.vlgmr.msra.gmra.mxu3 %v4361_v37  ;;  %v1589_v37 = vpop.f32.mrf.mxu1  ;;  %v3517_v58 = vor.u32 %v4073_v36, %v3516_v41  ;;  %v1525_v44 = vadd.f32 %v4395_v61, %v1512_v40  ;;  %v4069_v61 = vld [vmem:[#allocation5 + $0x14] sm:$0xf0]  ;;  %v3598_v40 = vld [vmem:[#allocation5 + $0xd8] sm:$0xf0]  ;;  %v3660_v41 = vld [vmem:[#allocation5 + $0x150] sm:$0xf] }
  0xf5   :  { %v3501_v18 = vor.u32 %v4069_v61, %v3500_v55  ;;  %v1590_v34 = vadd.f32 %v1589_v37, %v1577_v10  ;;  %v4109_v36 = vld [vmem:[#allocation5 + $0x154] sm:$0xf0]  ;;  %v3518_v55 = vld [vmem:[#allocation5 + $0x38] sm:$0xf0] }
  0xf6   :  { %2226 = vmatpush.bf16.msrb.mxu0 %v3541_v15  ;;  %v4418_v48 = vpop.f32.mrf.mxu2  ;;  %v1578_v53 = vpop.f32.mrf.mxu0  ;;  %v1538_v54 = vadd.f32 %v4397_v62, %v1525_v44  ;;  %v3550_v62 = vld [vmem:[#allocation5 + $0x78] sm:$0xf0]  ;;  %v3617_v15 = vor.u32 %v4096_v8, %v3614_v9  ;;  %v4090_v44 = vld [vmem:[#allocation5 + $0xc4] sm:$0xf]  ;;  %v3661_v45 = vor.u32 %v4109_v36, %v3660_v41 }
  0xf7   :  { %2239 = vmatpush.bf16.msrb.mxu1 %v3605_v24  ;;  %v4420_v49 = vpop.f32.mrf.mxu3  ;;  %v3553_v12 = vor.u32 %v4080_v3, %v3550_v62  ;;  %v4113_v24 = vld [vmem:[#allocation5 + $0x174] sm:$0xf0]  ;;  %v3593_v61 = vor.u32 %v4090_v44, %v3590_v46  ;;  %v4103_v62 = vld [vmem:[#allocation5 + $0x124] sm:$0xf0] }
  0xf8   :  { %v1551_v19 = vadd.f32 %v4399_v16, %v1538_v54  ;;  %v4078_v16 = vld [vmem:[#allocation5 + $0x64] sm:$0xf]  ;;  %v3677_v25 = vor.u32 %v4113_v24, %v3676_v23  ;;  %v3566_v23 = vld [vmem:[#allocation5 + $0x98] sm:$0xf0]  ;;  %v4129_v46 = vld [vmem:[#allocation5 + $0x1f4] sm:$0xf0] }
  0xf9   :  { %v3545_v29 = vor.u32 %v4078_v16, %v3542_v14  ;;  %v3569_v43 = vor.u32 %v4084_v21, %v3566_v23  ;;  %v3700_v21 = vld [vmem:[#allocation5 + $0x1a0] sm:$0xf]  ;;  %v4119_v23 = vld [vmem:[#allocation5 + $0x1a4] sm:$0xf0] }
  0xfa   :  { %2227 = vmatpush.bf16.msrb.mxu0 %v3533_v26  ;;  %v1827_v27 = vmax.f32 %v1551_v19, 0.0  ;;  %2251 = vmatpush.bf16.msrb.mxu2 %v3677_v25  ;;  %v3494_v25 = vld [vmem:[#allocation5 + $0x8] sm:$0xf0] }
  0xfb   :  { %2240 = vmatpush.bf16.msrb.mxu1 %v3597_v20  ;;  %v4076_v20 = vld [vmem:[#allocation5 + $0x54] sm:$0xf] }
  0xfc   :  { %v1591_v57 = vpop.f32.mrf.mxu1  ;;  %v4426_v26 = vpack.c.bf16 %v1827_v27, %v1827_v27  ;;  %v3537_v37 = vor.u32 %v4076_v20, %v3534_v31  ;;  %v4068_v27 = vld [vmem:[#allocation5 + $0x14] sm:$0xf]  ;;  %v3620_v20 = vld [vmem:[#allocation5 + $0x100] sm:$0xf]  ;;  %v4099_v31 = vld [vmem:[#allocation5 + $0x104] sm:$0xf0] }
  0xfd   :  { %v3644_v57 = vld [vmem:[#allocation5 + $0x130] sm:$0xf] }
  0xfe   :  { %2228 = vmatpush.bf16.msrb.mxu0 %v3525_v33  ;;  %v1604_v4 = vpop.f32.mrf.mxu2  ;;  %v4092_v33 = vld [vmem:[#allocation5 + $0xd4] sm:$0xf]  ;;  %2252 = vmatpush.bf16.msrb.mxu2 %v3669_v35 }
  0xff   :  { %2241 = vmatpush.bf16.msrb.mxu1 %v3589_v38  ;;  %v1617_v7 = vpop.f32.mrf.mxu3  ;;  %v1603_v38 = vadd.f32 %v4418_v48, %v1590_v34  ;;  %v4072_v48 = vld [vmem:[#allocation5 + $0x34] sm:$0xf]  ;;  %v3636_v4 = vld [vmem:[#allocation5 + $0x120] sm:$0xf]  ;;  %v4066_v34 = vld [vmem:[#allocation5 + $0x4] sm:$0xf] }
 0x100   :  { %v3521_v19 = vor.u32 %v4072_v48, %v3518_v55  ;;  %v3574_v7 = vld [vmem:[#allocation5 + $0xa8] sm:$0xf0]  ;;  %v3637_v16 = vor.u32 %v4103_v62, %v3636_v4  ;;  %v4112_v35 = vld [vmem:[#allocation5 + $0x174] sm:$0xf]  ;;  %v3497_v41 = vor.u32 %v4066_v34, %v3494_v25  ;;  %v4106_v48 = vld [vmem:[#allocation5 + $0x144] sm:$0xf] }
 0x101   :  { %v1616_v50 = vadd.f32 %v4420_v49, %v1603_v38  ;;  %v4070_v49 = vld [vmem:[#allocation5 + $0x24] sm:$0xf]  ;;  %v3577_v14 = vor.u32 %v4086_v6, %v3574_v7  ;;  %v3621_v38 = vor.u32 %v4099_v31, %v3620_v20  ;;  %v3638_v62 = vld [vmem:[#allocation5 + $0x128] sm:$0xf0]  ;;  %v3692_v31 = vld [vmem:[#allocation5 + $0x190] sm:$0xf] }
 0x102   :  { %2229 = vmatpush.bf16.msrb.mxu0 %v3517_v58  ;;  %v3601_v58 = vor.u32 %v4092_v33, %v3598_v40  ;;  %2253 = vmatpush.bf16.msrb.mxu2 %v3661_v45  ;;  %v3513_v9 = vor.u32 %v4070_v49, %v3510_v1  ;;  %v3678_v40 = vld [vmem:[#allocation5 + $0x178] sm:$0xf0]  ;;  %v3740_v45 = vld [vmem:[#allocation5 + $0x1f0] sm:$0xf]  ;;  %v3716_v49 = vld [vmem:[#allocation5 + $0x1c0] sm:$0xf] }
 0x103   :  { %2242 = vmatpush.bf16.msrb.mxu1 %v3581_v47  ;;  %v3652_v47 = vld [vmem:[#allocation5 + $0x140] sm:$0xf]  ;;  %v4102_v4 = vld [vmem:[#allocation5 + $0x124] sm:$0xf]  ;;  %v3622_v25 = vld [vmem:[#allocation5 + $0x108] sm:$0xf0] }
 0x104   :  { %v4098_v34 = vld [vmem:[#allocation5 + $0x104] sm:$0xf] }
 0x106   :  { %2230 = vmatpush.bf16.msrb.mxu0 %v3509_v52  ;;  %v3529_v52 = vor.u32 %v4074_v39, %v3526_v42  ;;  %v3681_v39 = vor.u32 %v4112_v35, %v3678_v40  ;;  %v4110_v42 = vld [vmem:[#allocation5 + $0x164] sm:$0xf]  ;;  %v4115_v35 = vld [vmem:[#allocation5 + $0x184] sm:$0xf0] }
 0x107   :  { %2243 = vmatpush.bf16.msrb.mxu1 %v3573_v56  ;;  %v3653_v56 = vor.u32 %v4107_v63, %v3652_v47  ;;  %v4108_v47 = vld [vmem:[#allocation5 + $0x154] sm:$0xf]  ;;  %v3741_v63 = vor.u32 %v4129_v46, %v3740_v45 }
 0x109   :  { %2254 = vmatpush.bf16.msrb.mxu2 %v3653_v56  ;;  %2264 = vmatpush.bf16.msrb.mxu3 %v3741_v63  ;;  %v3654_v56 = vld [vmem:[#allocation5 + $0x148] sm:$0xf0] }
 0x10a   :  { %2231 = vmatpush.bf16.msrb.mxu0 %v3501_v18  ;;  %v3582_v18 = vld [vmem:[#allocation5 + $0xb8] sm:$0xf0] }
 0x10b   :  { %2244 = vmatpush.bf16.msrb.mxu1 %v3565_v2  ;;  %v3645_v2 = vor.u32 %v4105_v22, %v3644_v57  ;;  %v3585_v3 = vor.u32 %v4088_v60, %v3582_v18  ;;  %v3657_v57 = vor.u32 %v4106_v48, %v3654_v56  ;;  %v3724_v22 = vld [vmem:[#allocation5 + $0x1d0] sm:$0xf]  ;;  %v4104_v60 = vld [vmem:[#allocation5 + $0x134] sm:$0xf]  ;;  %v3718_v56 = vld [vmem:[#allocation5 + $0x1c8] sm:$0xf0] }
 0x10d   :  { %2255 = vmatpush.bf16.msrb.mxu2 %v3645_v2 }
 0x10e   :  { %2232 = vmatpush.bf16.msrb.mxu0 %v3493_v11  ;;  %v1628_v51 = vpop.f32.mrf.mxu0 }
 0x10f   :  { %2245 = vmatpush.bf16.msrb.mxu1 %v3557_v13  ;;  %v1629_v53 = vadd.f32 %v1628_v51, %v1616_v50  ;;  %v1641_v54 = vpop.f32.mrf.mxu1  ;;  %v3662_v50 = vld [vmem:[#allocation5 + $0x158] sm:$0xf0] }
 0x110   :  { %v3665_v51 = vor.u32 %v4108_v47, %v3662_v50  ;;  %v4124_v50 = vld [vmem:[#allocation5 + $0x1d4] sm:$0xf] }
 0x111   :  { %2233 = vmatmul.bf16.vlgmr.msrb.gmra.mxu0 %v4426_v26  ;;  %v1642_v59 = vadd.f32 %v1641_v54, %v1629_v53  ;;  %2256 = vmatpush.bf16.msrb.mxu2 %v3637_v16  ;;  %v3732_v53 = vld [vmem:[#allocation5 + $0x1e0] sm:$0xf]  ;;  %v4127_v54 = vld [vmem:[#allocation5 + $0x1e4] sm:$0xf0]  ;;  %v3630_v16 = vld [vmem:[#allocation5 + $0x118] sm:$0xf0] }
 0x112   :  { %2277 = vmatpush.bf16.msra.mxu0 %v3553_v12  ;;  %v3502_v12 = vld [vmem:[#allocation5 + $0x18] sm:$0xf0] }
 0x113   :  { %2290 = vmatpush.bf16.msra.mxu1 %v3617_v15  ;;  %v1828_v0 = vmax.f32 %v1642_v59, 0.0  ;;  %v3628_v15 = vld [vmem:[#allocation5 + $0x110] sm:$0xf]  ;;  %v3505_v24 = vor.u32 %v4068_v27, %v3502_v12  ;;  %v4125_v59 = vld [vmem:[#allocation5 + $0x1d4] sm:$0xf0] }
 0x114   :  { %v4121_v27 = vld [vmem:[#allocation5 + $0x1b4] sm:$0xf0] }
 0x115   :  { %v1832_v5 = vpack.c.bf16 %v1828_v0, %v1828_v0  ;;  %v3646_v0 = vld [vmem:[#allocation5 + $0x138] sm:$0xf0] }
 0x116   :  { %2278 = vmatpush.bf16.msra.mxu0 %v3545_v29  ;;  %v4431_v8 = vpop.f32.mrf.mxu2  ;;  %v1630_v11 = vpop.f32.mrf.mxu0  ;;  %v3629_v29 = vor.u32 %v4101_v17, %v3628_v15  ;;  %v3649_v2 = vor.u32 %v4104_v60, %v3646_v0 }
 0x117   :  { %2291 = vmatpush.bf16.msra.mxu1 %v3609_v32  ;;  %v4433_v10 = vpop.f32.mrf.mxu3  ;;  %v1643_v13 = vpop.f32.mrf.mxu1  ;;  %v3558_v32 = vld [vmem:[#allocation5 + $0x88] sm:$0xf0]  ;;  %v3708_v11 = vld [vmem:[#allocation5 + $0x1b0] sm:$0xf] }
 0x118   :  { %2246 = vmatmul.bf16.vlgmr.msrb.gmra.mxu1 %v1832_v5  ;;  %2257 = vmatpush.bf16.msrb.mxu2 %v3629_v29  ;;  %v4100_v13 = vld [vmem:[#allocation5 + $0x114] sm:$0xf]  ;;  %v3701_v29 = vor.u32 %v4119_v23, %v3700_v21 }
 0x119   :  { %v3633_v17 = vor.u32 %v4100_v13, %v3630_v16 }
 0x11a   :  { %2279 = vmatpush.bf16.msra.mxu0 %v3537_v37  ;;  %v3561_v37 = vor.u32 %v4082_v30, %v3558_v32  ;;  %v3625_v30 = vor.u32 %v4098_v34, %v3622_v25  ;;  %v4117_v32 = vld [vmem:[#allocation5 + $0x194] sm:$0xf0] }
 0x11b   :  { %2292 = vmatpush.bf16.msra.mxu1 %v3601_v58  ;;  %v3670_v58 = vld [vmem:[#allocation5 + $0x168] sm:$0xf0] }
 0x11c   :  { %2258 = vmatpush.bf16.msrb.mxu2 %v3621_v38  ;;  %v3673_v44 = vor.u32 %v4110_v42, %v3670_v58  ;;  %v3742_v38 = vld [vmem:[#allocation5 + $0x1f8] sm:$0xf0]  ;;  %v4126_v58 = vld [vmem:[#allocation5 + $0x1e4] sm:$0xf] }
 0x11e   :  { %2280 = vmatpush.bf16.msra.mxu0 %v3529_v52  ;;  %v1656_v33 = vpop.f32.mrf.mxu2 }
 0x11f   :  { %2293 = vmatpush.bf16.msra.mxu1 %v3593_v61  ;;  %v1669_v36 = vpop.f32.mrf.mxu3  ;;  %v3733_v61 = vor.u32 %v4127_v54, %v3732_v53  ;;  %v3684_v33 = vld [vmem:[#allocation5 + $0x180] sm:$0xf] }
 0x120   :  { %2303 = vmatpush.bf16.msra.mxu2 %v3681_v39  ;;  %v3685_v40 = vor.u32 %v4115_v35, %v3684_v33  ;;  %v4128_v36 = vld [vmem:[#allocation5 + $0x1f4] sm:$0xf] }
 0x121   :  { %2265 = vmatpush.bf16.msrb.mxu3 %v3733_v61  ;;  %v4122_v61 = vld [vmem:[#allocation5 + $0x1c4] sm:$0xf] }
 0x122   :  { %2281 = vmatpush.bf16.msra.mxu0 %v3521_v19  ;;  %v3725_v19 = vor.u32 %v4125_v59, %v3724_v22  ;;  %v4120_v22 = vld [vmem:[#allocation5 + $0x1b4] sm:$0xf]  ;;  %v3710_v59 = vld [vmem:[#allocation5 + $0x1b8] sm:$0xf0] }
 0x123   :  { %2294 = vmatpush.bf16.msra.mxu1 %v3585_v3  ;;  %v4123_v3 = vld [vmem:[#allocation5 + $0x1c4] sm:$0xf0]  ;;  %v3713_v60 = vor.u32 %v4120_v22, %v3710_v59 }
 0x124   :  { %2304 = vmatpush.bf16.msra.mxu2 %v3673_v44  ;;  %v3734_v44 = vld [vmem:[#allocation5 + $0x1e8] sm:$0xf0] }
 0x125   :  { %2266 = vmatpush.bf16.msrb.mxu3 %v3725_v19  ;;  %v3737_v46 = vor.u32 %v4126_v58, %v3734_v44  ;;  %v3702_v19 = vld [vmem:[#allocation5 + $0x1a8] sm:$0xf0]  ;;  %v4137_v58 = vld [vmem:[%s4505_s5 + $0x38] sm:$0xff]  ;;  %v4136_v44 = vld [vmem:[%s4505_s5 + $0x30] sm:$0xff] }
 0x126   :  { %2282 = vmatpush.bf16.msra.mxu0 %v3513_v9  ;;  %v3641_v9 = vor.u32 %v4102_v4, %v3638_v62  ;;  %v313_v4 = vperm.slane %v4406_v28, 3  ;;  %v4139_v22 = vld [vmem:[%s4505_s5 + $0x48] sm:$0xff] }
 0x127   :  { %2295 = vmatpush.bf16.msra.mxu1 %v3577_v14  ;;  %v3709_v14 = vor.u32 %v4121_v27, %v3708_v11 }
 0x128   :  { %2305 = vmatpush.bf16.msra.mxu2 %v3665_v51  ;;  %v3726_v51 = vld [vmem:[#allocation5 + $0x1d8] sm:$0xf0] }
 0x129   :  { %v3729_v53 = vor.u32 %v4124_v50, %v3726_v51  ;;  %v4133_v50 = vld [vmem:[%s4505_s5 + $0x18] sm:$0xff]  ;;  %v4132_v51 = vld [vmem:[%s4505_s5 + $0x10] sm:$0xff] }
 0x12a   :  { %2283 = vmatpush.bf16.msra.mxu0 %v3505_v24 }
 0x12b   :  { %2296 = vmatpush.bf16.msra.mxu1 %v3569_v43 }
 0x12c   :  { %2306 = vmatpush.bf16.msra.mxu2 %v3657_v57  ;;  %v3721_v57 = vor.u32 %v4122_v61, %v3718_v56  ;;  %v4142_v61 = vld [vmem:[%s4505_s5 + $0x60] sm:$0xff]  ;;  %v4141_v56 = vld [vmem:[%s4505_s5 + $0x58] sm:$0xff] }
 0x12e   :  { %2284 = vmatpush.bf16.msra.mxu0 %v3497_v41  ;;  %v1680_v52 = vpop.f32.mrf.mxu0 }
 0x12f   :  { %2297 = vmatpush.bf16.msra.mxu1 %v3561_v37  ;;  %v1693_v55 = vpop.f32.mrf.mxu1  ;;  %v3745_v37 = vor.u32 %v4128_v36, %v3742_v38 }
 0x130   :  { %2307 = vmatpush.bf16.msra.mxu2 %v3649_v2  ;;  %v4116_v2 = vld [vmem:[#allocation5 + $0x194] sm:$0xf] }
 0x131   :  { %2285 = vmatmul.bf16.vlgmr.msra.gmra.mxu0 %v4426_v26  ;;  %v312_v26 = vperm.slane %v4406_v28, 2 }
 0x132   :  { %2298 = vmatmul.bf16.vlgmr.msra.gmra.mxu1 %v1832_v5  ;;  %v3717_v5 = vor.u32 %v4123_v3, %v3716_v49  ;;  %v3694_v3 = vld [vmem:[#allocation5 + $0x198] sm:$0xf0]  ;;  %2465 = vmatpush.bf16.msrb.mxu0 %v4137_v58 }
 0x133   :  { %v1655_v6 = vadd.f32 %v4431_v8, %v312_v26  ;;  %v3697_v62 = vor.u32 %v4116_v2, %v3694_v3 }
 0x134   :  { %2267 = vmatpush.bf16.msrb.mxu3 %v3717_v5  ;;  %2308 = vmatpush.bf16.msra.mxu2 %v3641_v9  ;;  %v4114_v5 = vld [vmem:[#allocation5 + $0x184] sm:$0xf] }
 0x135   :  { %v1668_v15 = vadd.f32 %v4433_v10, %v1655_v6  ;;  %v3693_v10 = vor.u32 %v4117_v32, %v3692_v31  ;;  %v3686_v6 = vld [vmem:[#allocation5 + $0x188] sm:$0xf0] }
 0x136   :  { %v1706_v18 = vpop.f32.mrf.mxu2  ;;  %v1682_v7 = vpop.f32.mrf.mxu0  ;;  %v3689_v9 = vor.u32 %v4114_v5, %v3686_v6  ;;  %2466 = vmatpush.bf16.msrb.mxu0 %v4136_v44 }
 0x137   :  { %v1719_v1 = vpop.f32.mrf.mxu3  ;;  %v1695_v12 = vpop.f32.mrf.mxu1  ;;  %v1681_v43 = vadd.f32 %v1680_v52, %v1668_v15 }
 0x138   :  { %2268 = vmatpush.bf16.msrb.mxu3 %v3709_v14  ;;  %2309 = vmatpush.bf16.msra.mxu2 %v3633_v17 }
 0x139   :  { %v1694_v20 = vadd.f32 %v1693_v55, %v1681_v43 }
 0x13b   :  { %v1707_v41 = vadd.f32 %v1706_v18, %v1694_v20  ;;  %v4118_v18 = vld [vmem:[#allocation5 + $0x1a4] sm:$0xf] }
 0x13c   :  { %2269 = vmatpush.bf16.msrb.mxu3 %v3701_v29  ;;  %2310 = vmatpush.bf16.msra.mxu2 %v3625_v30  ;;  %v1899_v30 = vld [vmem:[%s4504_s4] sm:$0x3] }
 0x13d   :  { %v1720_v39 = vadd.f32 %v1719_v1, %v1707_v41  ;;  %v3705_v1 = vor.u32 %v4118_v18, %v3702_v19  ;;  %v1901_v31 = vperm.slane %v1899_v30, 0  ;;  %v4153_v18 = vld [vmem:[#allocation7 + $0x38] sm:$0xff]  ;;  %v4152_v19 = vld [vmem:[#allocation7 + $0x30] sm:$0xff] }
 0x13e   :  { %v1708_v24 = vpop.f32.mrf.mxu2 }
 0x13f   :  { %v1721_v8 = vpop.f32.mrf.mxu3 }
 0x140   :  { %2270 = vmatpush.bf16.msrb.mxu3 %v3693_v10 }
 0x144   :  { %2271 = vmatpush.bf16.msrb.mxu3 %v3685_v40  ;;  %v1902_v40 = vperm.slane %v1899_v30, 1 }
 0x148   :  { %2316 = vmatpush.bf16.msra.mxu3 %v3745_v37 }
 0x14c   :  { %2317 = vmatpush.bf16.msra.mxu3 %v3737_v46  ;;  %v4134_v46 = vld [vmem:[%s4505_s5 + $0x20] sm:$0xff] }
 0x14e   :  { %v1732_v42 = vpop.f32.mrf.mxu0 }
 0x14f   :  { %v1733_v45 = vadd.f32 %v1732_v42, %v1720_v39  ;;  %v1745_v47 = vpop.f32.mrf.mxu1 }
 0x150   :  { %2318 = vmatpush.bf16.msra.mxu3 %v3729_v53  ;;  %v1746_v7 = vadd.f32 %v1745_v47, %v313_v4  ;;  %v4145_v47 = vld [vmem:[%s4505_s5 + $0x78] sm:$0xff]  ;;  %v4131_v53 = vld [vmem:[%s4505_s5 + $0x8] sm:$0xff] }
 0x151   :  { %v1829_v63 = vmax.f32 %v1733_v45, 0.0  ;;  %v4135_v45 = vld [vmem:[%s4505_s5 + $0x28] sm:$0xff]  ;;  %2478 = vmatpush.bf16.msrb.mxu1 %v4145_v47 }
 0x152   :  { %2467 = vmatpush.bf16.msrb.mxu0 %v4135_v45 }
 0x153   :  { %v1833_v52 = vpack.c.bf16 %v1829_v63, %v1829_v63  ;;  %v4144_v63 = vld [vmem:[%s4505_s5 + $0x70] sm:$0xff] }
 0x154   :  { %2319 = vmatpush.bf16.msra.mxu3 %v3721_v57  ;;  %v4140_v57 = vld [vmem:[%s4505_s5 + $0x50] sm:$0xff] }
 0x155   :  { %2259 = vmatmul.bf16.vlgmr.msrb.gmra.mxu2 %v1833_v52  ;;  %2479 = vmatpush.bf16.msrb.mxu1 %v4144_v63 }
 0x156   :  { %v1758_v54 = vpop.f32.mrf.mxu2  ;;  %v1734_v55 = vpop.f32.mrf.mxu0  ;;  %2468 = vmatpush.bf16.msrb.mxu0 %v4134_v46  ;;  %2561 = vmatpush.bf16.msrb.mxu2 %v4153_v18 }
 0x157   :  { %v1771_v48 = vpop.f32.mrf.mxu3  ;;  %v1747_v26 = vpop.f32.mrf.mxu1  ;;  %v1759_v11 = vadd.f32 %v1758_v54, %v1746_v7  ;;  %v4143_v54 = vld [vmem:[%s4505_s5 + $0x68] sm:$0xff]  ;;  %v4130_v55 = vld [vmem:[%s4505_s5] sm:$0xff] }
 0x158   :  { %2320 = vmatpush.bf16.msra.mxu3 %v3713_v60  ;;  %v4138_v60 = vld [vmem:[%s4505_s5 + $0x40] sm:$0xff] }
 0x159   :  { %v1772_v27 = vadd.f32 %v1771_v48, %v1759_v11  ;;  %2480 = vmatpush.bf16.msrb.mxu1 %v4143_v54 }
 0x15a   :  { %2469 = vmatpush.bf16.msrb.mxu0 %v4133_v50  ;;  %2562 = vmatpush.bf16.msrb.mxu2 %v4152_v19 }
 0x15c   :  { %2321 = vmatpush.bf16.msra.mxu3 %v3705_v1 }
 0x15d   :  { %2481 = vmatpush.bf16.msrb.mxu1 %v4142_v61 }
 0x15e   :  { %v1760_v0 = vpop.f32.mrf.mxu2  ;;  %2470 = vmatpush.bf16.msrb.mxu0 %v4132_v51 }
 0x15f   :  { %v1773_v49 = vpop.f32.mrf.mxu3 }
 0x160   :  { %2322 = vmatpush.bf16.msra.mxu3 %v3697_v62 }
 0x161   :  { %2482 = vmatpush.bf16.msrb.mxu1 %v4141_v56 }
 0x162   :  { %2471 = vmatpush.bf16.msrb.mxu0 %v4131_v53 }
 0x164   :  { %2323 = vmatpush.bf16.msra.mxu3 %v3689_v9 }
 0x165   :  { %2311 = vmatmul.bf16.vlgmr.msra.gmra.mxu2 %v1833_v52  ;;  %2483 = vmatpush.bf16.msrb.mxu1 %v4140_v57 }
 0x166   :  { %2472 = vmatpush.bf16.msrb.mxu0 %v4130_v55 }
 0x169   :  { %2484 = vmatpush.bf16.msrb.mxu1 %v4139_v22 }
 0x16d   :  { %2485 = vmatpush.bf16.msrb.mxu1 %v4138_v60 }
 0x16e   :  { %v1784_v12 = vpop.f32.mrf.mxu0 }
 0x16f   :  { %v1797_v13 = vpop.f32.mrf.mxu1  ;;  %v1785_v16 = vadd.f32 %v1784_v12, %v1772_v27  ;;  %v4151_v27 = vld [vmem:[#allocation7 + $0x28] sm:$0xff]  ;;  %v4150_v12 = vld [vmem:[#allocation7 + $0x20] sm:$0xff] }
 0x170   :  { %2563 = vmatpush.bf16.msrb.mxu2 %v4151_v27 }
 0x171   :  { %v1798_v14 = vadd.f32 %v1797_v13, %v1785_v16  ;;  %v4149_v13 = vld [vmem:[#allocation7 + $0x18] sm:$0xff]  ;;  %v4148_v16 = vld [vmem:[#allocation7 + $0x10] sm:$0xff] }
 0x174   :  { %2564 = vmatpush.bf16.msrb.mxu2 %v4150_v12 }
 0x176   :  { %v1810_v15 = vpop.f32.mrf.mxu2  ;;  %v1786_v23 = vpop.f32.mrf.mxu0 }
 0x177   :  { %v1811_v17 = vadd.f32 %v1810_v15, %v1798_v14  ;;  %v1823_v21 = vpop.f32.mrf.mxu3  ;;  %v1799_v28 = vpop.f32.mrf.mxu1  ;;  %v4147_v14 = vld [vmem:[#allocation7 + $0x8] sm:$0xff]  ;;  %v4146_v15 = vld [vmem:[#allocation7] sm:$0xff] }
 0x178   :  { %2565 = vmatpush.bf16.msrb.mxu2 %v4149_v13  ;;  %v4164_v23 = vld [vmem:[%s4506_s6] ss:$0 sm:$0xff] }
 0x179   :  { %v1824_v24 = vadd.f32 %v1823_v21, %v1811_v17 }
 0x17b   :  { %v1830_v34 = vmax.f32 %v1824_v24, 0.0 }
 0x17c   :  { %2566 = vmatpush.bf16.msrb.mxu2 %v4148_v16 }
 0x17d   :  { %v1834_v25 = vpack.c.bf16 %v1830_v34, %v1830_v34 }
 0x17e   :  { %v1812_v8 = vpop.f32.mrf.mxu2 }
 0x17f   :  { %v1825_v29 = vpop.f32.mrf.mxu3  ;;  %2272 = vmatmul.bf16.vlgmr.msrb.gmra.mxu3 %v1834_v25 }
 0x180   :  { %2567 = vmatpush.bf16.msrb.mxu2 %v4147_v14 }
 0x184   :  { %2568 = vmatpush.bf16.msrb.mxu2 %v4146_v15 }
 0x18e   :  { %v2234_v43 = vpop.f32.mrf.mxu0 }
 0x18f   :  { %2324 = vmatmul.bf16.vlgmr.msra.gmra.mxu3 %v1834_v25  ;;  %v2235_v32 = vadd.f32 %v2234_v43, %v1901_v31  ;;  %v4165_v43 = vld [vmem:[%s4508_s8] ss:$0 sm:$0xff] }
 0x195   :  { %v2247_v33 = vpop.f32.mrf.mxu1 }
 0x196   :  { %v2236_v20 = vpop.f32.mrf.mxu0  ;;  %v2248_v10 = vadd.f32 %v2247_v33, %v2235_v32 }
 0x19d   :  { %v2249_v35 = vpop.f32.mrf.mxu1 }
 0x1ae   :  { %v2286_v41 = vpop.f32.mrf.mxu0 }
 0x1af   :  { %v2287_v36 = vadd.f32 %v2286_v41, %v1902_v40  ;;  %v2299_v38 = vpop.f32.mrf.mxu1 }
 0x1b1   :  { %v2300_v37 = vadd.f32 %v2299_v38, %v2287_v36 }
 0x1b6   :  { %v2288_v39 = vpop.f32.mrf.mxu0 }
 0x1b7   :  { %v2301_v42 = vpop.f32.mrf.mxu1 }
 0x1d8   :  { %v2260_v52 = vpop.f32.mrf.mxu2 }
 0x1d9   :  { %v2261_v0 = vadd.f32 %v2260_v52, %v2248_v10 }
 0x1e0   :  { %v2262_v48 = vpop.f32.mrf.mxu2 }
 0x1e8   :  { %v2312_v26 = vpop.f32.mrf.mxu2 }
 0x1e9   :  { %v2313_v62 = vadd.f32 %v2312_v26, %v2300_v37 }
 0x1f0   :  { %v2314_v59 = vpop.f32.mrf.mxu2 }
 0x202   :  { %v2273_v49 = vpop.f32.mrf.mxu3 }
 0x203   :  { %v2274_v1 = vadd.f32 %v2273_v49, %v2261_v0 }
 0x205   :  { %v2329_v2 = vmax.f32 %v2274_v1, 0.0 }
 0x207   :  { %v2331_v3 = vpack.c.bf16 %v2329_v2, %v2329_v2 }
 0x209   :  { %2473 = vmatmul.bf16.vlgmr.msrb.gmra.mxu0 %v2331_v3 }
 0x20a   :  { %v2275_v4 = vpop.f32.mrf.mxu3 }
 0x212   :  { %v2325_v5 = vpop.f32.mrf.mxu3 }
 0x213   :  { %v2326_v6 = vadd.f32 %v2325_v5, %v2313_v62 }
 0x215   :  { %v2330_v7 = vmax.f32 %v2326_v6, 0.0 }
 0x217   :  { %v2332_v9 = vpack.c.bf16 %v2330_v7, %v2330_v7 }
 0x219   :  { %2486 = vmatmul.bf16.vlgmr.msrb.gmra.mxu1 %v2332_v9 }
 0x21a   :  { %v2327_v11 = vpop.f32.mrf.mxu3 }
 0x286   :  { %v2474_v17 = vpop.f32.mrf.mxu0 }
 0x287   :  { %v2475_v28 = vadd.f32 %v4164_v23, %v2474_v17 }
 0x28e   :  { %v2476_v21 = vpop.f32.mrf.mxu0 }
 0x296   :  { %v2487_v24 = vpop.f32.mrf.mxu1 }
 0x297   :  { %v2488_v34 = vadd.f32 %v2487_v24, %v2475_v28 }
 0x299   :  { %v2491_v25 = vmax.f32 %v2488_v34, 0.0 }
 0x29b   :  { %v2492_v8 = vpack.c.bf16 %v2491_v25, %v2491_v25 }
 0x29d   :  { %2569 = vmatmul.bf16.vlgmr.msrb.gmra.mxu2 %v2492_v8 }
 0x29e   :  { %v2489_v29 = vpop.f32.mrf.mxu1 }
 0x320   :  { %v2570_v30 = vpop.f32.mrf.mxu2 }
 0x321   :  { %v2571_v20 = vadd.f32 %v4165_v43, %v2570_v30 }
 0x323   :  { %v2574_v31 = vmax.f32 %v2571_v20, 0.0 }
 0x325   :  { %2575 = vst [vmem:[#allocation8] sm:$0xff] %v2574_v31 }
 0x326   :  { %2586 = dma.vmem_to_hbm [thread:$0]  %s2582_s23, 128, %s2584_s26, [#allocation4]  }
 0x328   :  { %v2572_v32 = vpop.f32.mrf.mxu2 }
 0x329   :  { %4266 = dma.done.wait [#allocation4], 128  }
 0x32a   :  { %4267 = vsyncadd [#allocation4], 4294967168 }
 0x32b   :  { %2591 = vsyncpa [#allocation3], 1 }
 0x32c   :  { %2592 = vsyncpa [#allocation6], 1 }
 0x32d   :  { %2593 = vsyncpa [#allocation4], 1 }

</bundles_post_ra>
